<compile_context>
chip_gen: v7x
topology: tpu7x:2x2x1
jax: 0.10.0
libtpu: 0.0.40
codegen_flags: <defaults>
</compile_context>

<pallas_src>
import math

import jax
import jax.numpy as jnp
from jax import lax
from jax.experimental import pallas as pl
from jax.experimental.pallas import tpu as pltpu


# ----------------------------------------------------------------------------
# Kernel 1: fused per-axis Net, one grid step per axis (a in {0,1,2}):
#   normalize-to-[0,1] (masked to this axis' valid rows)
#   Gaussian Fourier encoding (cos|sin concat -> single lane-dense matmul)
#   4-layer MLP (ReLU x3 + final linear)
# ----------------------------------------------------------------------------
def fused_net_kernel(nvalid_ref,                       # SMEM (3,) scalar prefetch
                     x_ref, benc_ref,
                     w1_ref, b1_ref, w2_ref, b2_ref,
                     w3_ref, b3_ref, w4_ref, b4_ref,
                     o_ref):
    a = pl.program_id(0)
    nv = nvalid_ref[a]                                 # valid row count for this axis

    x = x_ref[...]                                     # (n_pad, 1)
    n_pad = x.shape[0]
    row = lax.broadcasted_iota(jnp.int32, (n_pad, 1), 0)
    valid = row < nv

    # --- normalize_to_01 over valid rows only (padding rows are masked out) ---
    mn = jnp.min(jnp.where(valid, x, jnp.inf), keepdims=True)      # (1, 1)
    mx = jnp.max(jnp.where(valid, x, -jnp.inf), keepdims=True)     # (1, 1)
    denom = mx - mn
    is_const = denom == 0.0
    xn = jnp.where(is_const, 0.0, (x - mn) / jnp.where(is_const, 1.0, denom))

    # --- rff GaussianEncoding: cat(cos(2*pi*x@b.T), sin(2*pi*x@b.T)) ---
    v = (2.0 * math.pi) * (xn * benc_ref[...])         # (n_pad, posdim//2)
    enc = jnp.concatenate([jnp.cos(v), jnp.sin(v)], axis=-1)   # (n_pad, posdim)

    # --- 4-layer MLP, single full-K matmul per layer ---
    h = jnp.maximum(
        jnp.dot(enc, w1_ref[...], preferred_element_type=jnp.float32) + b1_ref[...], 0.0)
    h = jnp.maximum(
        jnp.dot(h, w2_ref[...], preferred_element_type=jnp.float32) + b2_ref[...], 0.0)
    h = jnp.maximum(
        jnp.dot(h, w3_ref[...], preferred_element_type=jnp.float32) + b3_ref[...], 0.0)
    o_ref[...] = jnp.dot(h, w4_ref[...], preferred_element_type=jnp.float32) + b4_ref[...]


def run_nets(U_in, V_in, W_in, b_enc, pU, pV, pW):
    """One fused pallas_call computing U, V, W factor matrices."""
    ns = (U_in.shape[0], V_in.shape[0], W_in.shape[0])
    n_pad = max(8, ((max(ns) + 7) // 8) * 8)           # sublane-aligned shared length

    def pad(x):
        return jnp.pad(x, ((0, n_pad - x.shape[0]), (0, 0)))

    xs = jnp.stack([pad(U_in), pad(V_in), pad(W_in)])             # (3, n_pad, 1)
    nvalid = jnp.asarray(ns, dtype=jnp.int32)                     # (3,)

    # stack the three nets' params: each becomes (3, d0, d1)
    stacked = [jnp.stack([pU[i], pV[i], pW[i]]) for i in range(8)]
    half = b_enc.shape[1]
    rank = pU[6].shape[1]

    in_specs = [
        pl.BlockSpec((None, n_pad, 1), lambda a, nv: (a, 0, 0)),   # stacked inputs
        pl.BlockSpec((1, half), lambda a, nv: (0, 0)),             # shared encoding matrix
    ]
    for p in stacked:
        in_specs.append(
            pl.BlockSpec((None, p.shape[1], p.shape[2]), lambda a, nv: (a, 0, 0)))

    grid_spec = pltpu.PrefetchScalarGridSpec(
        num_scalar_prefetch=1,
        grid=(3,),
        in_specs=in_specs,
        out_specs=pl.BlockSpec((None, n_pad, rank), lambda a, nv: (a, 0, 0)),
    )

    out = pl.pallas_call(
        fused_net_kernel,
        out_shape=jax.ShapeDtypeStruct((3, n_pad, rank), jnp.float32),
        grid_spec=grid_spec,
        compiler_params=pltpu.CompilerParams(
            dimension_semantics=("parallel",)),   # 3 independent nets -> both TCs on v7x
    )(nvalid, xs, b_enc, *stacked)

    return out[0, :ns[0]], out[1, :ns[1]], out[2, :ns[2]]


# ----------------------------------------------------------------------------
# Kernel 2: out[i, j*K+k] = sum_r U[i,r] * V[j,r] * W[k,r]
# Tiled over (I-tiles, J-tiles). RHS factors arrive contraction-major (R, .).
# The Khatri-Rao of the two smaller factors is built column-blockwise in VMEM
# (no (I*J, R) intermediate, no reshape), then one lane-dense MXU matmul.
# ----------------------------------------------------------------------------
def einsum_kernel(u_ref, vt_ref, wt_ref, o_ref):
    u = u_ref[...]                                    # (TI, R)
    vt = vt_ref[...]                                  # (R, TJ)
    wt = wt_ref[...]                                  # (R, K)
    tj = vt.shape[1]
    # krt[:, j*K:(j+1)*K] = vt[:, j:j+1] * wt   -> (R, TJ*K)
    krt = jnp.concatenate([vt[:, j:j + 1] * wt for j in range(tj)], axis=-1)
    o_ref[...] = jnp.dot(u, krt, preferred_element_type=jnp.float32)   # (TI, TJ*K)


def _pick_row_tile(n):
    for c in (256, 128, 64, 32, 16, 8):
        if n % c == 0 and n // c >= 2:
            return c
    return n


def run_einsum(U, V, W):
    I, R = U.shape
    J = V.shape[0]
    K = W.shape[0]
    # pre-transpose in the surrounding XLA program (free; avoids in-kernel XLU transpose)
    Vt = V.T                                          # (R, J)
    Wt = W.T                                          # (R, K)

    TI = _pick_row_tile(I)
    TJ = 128 if (J > 128 and J % 128 == 0) else J
    grid = (I // TI, J // TJ)

    out2d = pl.pallas_call(
        einsum_kernel,
        out_shape=jax.ShapeDtypeStruct((I, J * K), jnp.float32),
        grid=grid,
        in_specs=[
            pl.BlockSpec((TI, R), lambda i, j: (i, 0)),
            pl.BlockSpec((R, TJ), lambda i, j: (0, j)),
            pl.BlockSpec((R, K), lambda i, j: (0, 0)),
        ],
        out_specs=pl.BlockSpec((TI, TJ * K), lambda i, j: (i, j)),
        compiler_params=pltpu.CompilerParams(
            dimension_semantics=("parallel", "parallel"),
            vmem_limit_bytes=64 * 1024 * 1024),
    )(U, Vt, Wt)
    return out2d.reshape(I, J, K)


# ----------------------------------------------------------------------------
# Parameter construction (deterministic, mirrors the PyTorch init scheme)
# ----------------------------------------------------------------------------
def init_net_params(key, posdim, mid, rank):
    ks = jax.random.split(key, 8)

    def linear(kw, kb, fan_in, fan_out, first=False, last=False):
        if first:
            bound = 1.0 / fan_in                       # uniform(-1/in, 1/in)
        elif last:
            bound = 1.0 / math.sqrt(fan_in)            # torch default kaiming-uniform bound
        else:
            bound = math.sqrt(2.0) * math.sqrt(6.0 / (fan_in + fan_out))  # xavier, relu gain
        w = jax.random.uniform(kw, (fan_in, fan_out), jnp.float32, -bound, bound)
        b_bound = 1.0 / math.sqrt(fan_in)
        b = jax.random.uniform(kb, (1, fan_out), jnp.float32, -b_bound, b_bound)
        return w, b

    w1, b1 = linear(ks[0], ks[1], posdim, mid, first=True)
    w2, b2 = linear(ks[2], ks[3], mid, mid)
    w3, b3 = linear(ks[4], ks[5], mid, mid)
    w4, b4 = linear(ks[6], ks[7], mid, rank, last=True)
    return (w1, b1, w2, b2, w3, b3, w4, b4)


# ----------------------------------------------------------------------------
# Pure-JAX reference (correctness check)
# ----------------------------------------------------------------------------
def ref_net(x, b_enc, params):
    w1, b1, w2, b2, w3, b3, w4, b4 = params
    hp = jax.lax.Precision.HIGHEST
    mn, mx = x.min(), x.max()
    xn = jnp.where(mx == mn, jnp.zeros_like(x), (x - mn) / (mx - mn))
    v = 2.0 * math.pi * (xn @ b_enc)
    enc = jnp.concatenate([jnp.cos(v), jnp.sin(v)], axis=-1)
    h = jax.nn.relu(jnp.dot(enc, w1, precision=hp) + b1)
    h = jax.nn.relu(jnp.dot(h, w2, precision=hp) + b2)
    h = jax.nn.relu(jnp.dot(h, w3, precision=hp) + b3)
    return jnp.dot(h, w4, precision=hp) + b4


# ----------------------------------------------------------------------------
# Full Network.forward
# ----------------------------------------------------------------------------
def network_forward(U_in, V_in, W_in, b_enc, pU, pV, pW):
    U, V, W = run_nets(U_in, V_in, W_in, b_enc, pU, pV, pW)
    out = run_einsum(U, V, W)
    return out, U, V, W


if __name__ == "__main__":
    # Small-scale stand-ins for (rank=1024, posdim=128, mid_channel=512).
    # K != I,J deliberately exercises the padded/masked fused-net path.
    POSDIM = 128
    MID = 128
    RANK = 256
    I, J, K = 16, 16, 24
    SIGMA = 16.0

    key = jax.random.PRNGKey(0)
    k_enc, k_u, k_v, k_w, k_pu, k_pv, k_pw = jax.random.split(key, 7)

    # rff.layers.GaussianEncoding: b ~ N(0, sigma^2), shape (posdim//2, 1); pass b.T
    b_enc = (SIGMA * jax.random.normal(k_enc, (POSDIM // 2, 1), jnp.float32)).T  # (1, 64)

    U_input = jax.random.normal(k_u, (I, 1), jnp.float32)
    V_input = jax.random.normal(k_v, (J, 1), jnp.float32)
    W_input = jax.random.normal(k_w, (K, 1), jnp.float32)

    pU = init_net_params(k_pu, POSDIM, MID, RANK)
    pV = init_net_params(k_pv, POSDIM, MID, RANK)
    pW = init_net_params(k_pw, POSDIM, MID, RANK)

    out, U, V, W = network_forward(U_input, V_input, W_input, b_enc, pU, pV, pW)
    jax.block_until_ready(out)

    # correctness vs pure-JAX reference
    U_ref = ref_net(U_input, b_enc, pU)
    V_ref = ref_net(V_input, b_enc, pV)
    W_ref = ref_net(W_input, b_enc, pW)
    out_ref = jnp.einsum('ir,jr,kr->ijk', U_ref, V_ref, W_ref,
                         precision=jax.lax.Precision.HIGHEST)

    assert out.shape == (I, J, K)
    assert U.shape == (I, RANK) and V.shape == (J, RANK) and W.shape == (K, RANK)
    assert jnp.allclose(U, U_ref, atol=1e-4, rtol=1e-4)
    assert jnp.allclose(V, V_ref, atol=1e-4, rtol=1e-4)
    assert jnp.allclose(W, W_ref, atol=1e-4, rtol=1e-4)
    assert jnp.allclose(out, out_ref, atol=2e-3, rtol=2e-3)

    print("KERNEL_OK")
</pallas_src>

<mosaic_0001>
module attributes {stable_mosaic.version = 11 : i64} {
  func.func @fused_net_kernel(%arg0: i32, %arg1: memref<3xi32, #tpu.memory_space<smem>>, %arg2: memref<1x24x1xf32, #tpu.memory_space<vmem>>, %arg3: memref<1x64xf32, #tpu.memory_space<vmem>>, %arg4: memref<1x128x128xf32, #tpu.memory_space<vmem>>, %arg5: memref<1x1x128xf32, #tpu.memory_space<vmem>>, %arg6: memref<1x128x128xf32, #tpu.memory_space<vmem>>, %arg7: memref<1x1x128xf32, #tpu.memory_space<vmem>>, %arg8: memref<1x128x128xf32, #tpu.memory_space<vmem>>, %arg9: memref<1x1x128xf32, #tpu.memory_space<vmem>>, %arg10: memref<1x128x256xf32, #tpu.memory_space<vmem>>, %arg11: memref<1x1x256xf32, #tpu.memory_space<vmem>>, %arg12: memref<1x24x256xf32, #tpu.memory_space<vmem>>) attributes {dimension_semantics = [#tpu.dimension_semantics<parallel>], iteration_bounds = array<i64: 3>, scalar_prefetch = 1 : i64, scratch_operands = 0 : i64, tpu.core_type = #tpu.core_type<tc>, window_params = [{transform_indices = @transform_0, window_bounds = array<i64: 1, 24, 1>}, {pipeline_mode = #tpu.pipeline_mode<synchronous>, transform_indices = @transform_1, window_bounds = array<i64: 1, 64>}, {transform_indices = @transform_2, window_bounds = array<i64: 1, 128, 128>}, {transform_indices = @transform_3, window_bounds = array<i64: 1, 1, 128>}, {transform_indices = @transform_4, window_bounds = array<i64: 1, 128, 128>}, {transform_indices = @transform_5, window_bounds = array<i64: 1, 1, 128>}, {transform_indices = @transform_6, window_bounds = array<i64: 1, 128, 128>}, {transform_indices = @transform_7, window_bounds = array<i64: 1, 1, 128>}, {transform_indices = @transform_8, window_bounds = array<i64: 1, 128, 256>}, {transform_indices = @transform_9, window_bounds = array<i64: 1, 1, 256>}, {transform_indices = @transform_10, window_bounds = array<i64: 1, 24, 256>}]} {
    %0 = arith.index_cast %arg0 : i32 to index
    %1 = memref.load %arg1[%0] : memref<3xi32, #tpu.memory_space<smem>>
    %c0 = arith.constant 0 : index
    %c0_0 = arith.constant 0 : index
    %c0_1 = arith.constant 0 : index
    %2 = vector.load %arg2[%c0, %c0_0, %c0_1] : memref<1x24x1xf32, #tpu.memory_space<vmem>>, vector<1x24x1xf32>
    %3 = vector.shape_cast %2 : vector<1x24x1xf32> to vector<24x1xf32>
    %4 = tpu.iota {dimensions = array<i32: 0>} : vector<24x1xi32>
    %5 = vector.broadcast %1 : i32 to vector<24x1xi32>
    %6 = arith.cmpi slt, %4, %5 : vector<24x1xi32>
    %cst = arith.constant 0x7F800000 : f32
    %7 = vector.broadcast %cst : f32 to vector<24x1xf32>
    %8 = arith.select %6, %3, %7 : vector<24x1xi1>, vector<24x1xf32>
    %9 = vector.shape_cast %8 : vector<24x1xf32> to vector<1x24x1xf32>
    %cst_2 = arith.constant dense<0x7F800000> : vector<1xf32>
    %10 = vector.multi_reduction <minimumf>, %9, %cst_2 [1, 2] : vector<1x24x1xf32> to vector<1xf32>
    %11 = vector.shape_cast %10 : vector<1xf32> to vector<1x1x1xf32>
    %12 = vector.extract %11[0, 0, 0] : f32 from vector<1x1x1xf32>
    %13 = vector.broadcast %12 : f32 to vector<1x1xf32>
    %cst_3 = arith.constant 0xFF800000 : f32
    %14 = vector.broadcast %cst_3 : f32 to vector<24x1xf32>
    %15 = arith.select %6, %3, %14 : vector<24x1xi1>, vector<24x1xf32>
    %16 = vector.shape_cast %15 : vector<24x1xf32> to vector<1x24x1xf32>
    %cst_4 = arith.constant dense<0xFF800000> : vector<1xf32>
    %17 = vector.multi_reduction <maximumf>, %16, %cst_4 [1, 2] : vector<1x24x1xf32> to vector<1xf32>
    %18 = vector.shape_cast %17 : vector<1xf32> to vector<1x1x1xf32>
    %19 = vector.extract %18[0, 0, 0] : f32 from vector<1x1x1xf32>
    %20 = vector.broadcast %19 : f32 to vector<1x1xf32>
    %21 = arith.subf %20, %13 : vector<1x1xf32>
    %cst_5 = arith.constant 0.000000e+00 : f32
    %22 = vector.broadcast %cst_5 : f32 to vector<1x1xf32>
    %23 = arith.cmpf oeq, %21, %22 : vector<1x1xf32>
    %24 = vector.broadcast %13 : vector<1x1xf32> to vector<24x1xf32>
    %25 = arith.subf %3, %24 : vector<24x1xf32>
    %cst_6 = arith.constant 1.000000e+00 : f32
    %26 = vector.broadcast %cst_6 : f32 to vector<1x1xf32>
    %27 = arith.select %23, %26, %21 : vector<1x1xi1>, vector<1x1xf32>
    %28 = vector.broadcast %27 : vector<1x1xf32> to vector<24x1xf32>
    %29 = arith.divf %25, %28 : vector<24x1xf32>
    %cst_7 = arith.constant 0.000000e+00 : f32
    %30 = vector.shape_cast %23 : vector<1x1xi1> to vector<1x1xi1>
    %31 = vector.broadcast %30 : vector<1x1xi1> to vector<24x1xi1>
    %32 = vector.broadcast %cst_7 : f32 to vector<24x1xf32>
    %33 = arith.select %31, %32, %29 : vector<24x1xi1>, vector<24x1xf32>
    %c0_8 = arith.constant 0 : index
    %c0_9 = arith.constant 0 : index
    %34 = vector.load %arg3[%c0_8, %c0_9] : memref<1x64xf32, #tpu.memory_space<vmem>>, vector<1x64xf32>
    %35 = vector.broadcast %33 : vector<24x1xf32> to vector<24x64xf32>
    %36 = vector.broadcast %34 : vector<1x64xf32> to vector<24x64xf32>
    %37 = arith.mulf %35, %36 : vector<24x64xf32>
    %cst_10 = arith.constant 6.28318548 : f32
    %38 = vector.broadcast %cst_10 : f32 to vector<24x64xf32>
    %39 = arith.mulf %38, %37 : vector<24x64xf32>
    %40 = math.cos %39 : vector<24x64xf32>
    %41 = math.sin %39 : vector<24x64xf32>
    %42 = tpu.concatenate %40, %41 in 1 : vector<24x64xf32>, vector<24x64xf32> -> vector<24x128xf32>
    %c0_11 = arith.constant 0 : index
    %c0_12 = arith.constant 0 : index
    %c0_13 = arith.constant 0 : index
    %43 = vector.load %arg4[%c0_11, %c0_12, %c0_13] : memref<1x128x128xf32, #tpu.memory_space<vmem>>, vector<1x128x128xf32>
    %44 = vector.shape_cast %43 : vector<1x128x128xf32> to vector<128x128xf32>
    %cst_14 = arith.constant dense<0.000000e+00> : vector<24x128xf32>
    %45 = tpu.matmul %42, %44, %cst_14 {dimension_numbers = #tpu.dot_dimension_numbers<[1], [0], [0], [1], [0, 0, 1, 1], [], []>} : vector<24x128xf32>, vector<128x128xf32>, vector<24x128xf32> -> vector<24x128xf32>
    %c0_15 = arith.constant 0 : index
    %c0_16 = arith.constant 0 : index
    %c0_17 = arith.constant 0 : index
    %46 = vector.load %arg5[%c0_15, %c0_16, %c0_17] : memref<1x1x128xf32, #tpu.memory_space<vmem>>, vector<1x1x128xf32>
    %47 = vector.shape_cast %46 : vector<1x1x128xf32> to vector<1x128xf32>
    %48 = vector.broadcast %47 : vector<1x128xf32> to vector<24x128xf32>
    %49 = arith.addf %45, %48 : vector<24x128xf32>
    %cst_18 = arith.constant 0.000000e+00 : f32
    %50 = vector.broadcast %cst_18 : f32 to vector<24x128xf32>
    %51 = arith.maximumf %49, %50 : vector<24x128xf32>
    %c0_19 = arith.constant 0 : index
    %c0_20 = arith.constant 0 : index
    %c0_21 = arith.constant 0 : index
    %52 = vector.load %arg6[%c0_19, %c0_20, %c0_21] : memref<1x128x128xf32, #tpu.memory_space<vmem>>, vector<1x128x128xf32>
    %53 = vector.shape_cast %52 : vector<1x128x128xf32> to vector<128x128xf32>
    %cst_22 = arith.constant dense<0.000000e+00> : vector<24x128xf32>
    %54 = tpu.matmul %51, %53, %cst_22 {dimension_numbers = #tpu.dot_dimension_numbers<[1], [0], [0], [1], [0, 0, 1, 1], [], []>} : vector<24x128xf32>, vector<128x128xf32>, vector<24x128xf32> -> vector<24x128xf32>
    %c0_23 = arith.constant 0 : index
    %c0_24 = arith.constant 0 : index
    %c0_25 = arith.constant 0 : index
    %55 = vector.load %arg7[%c0_23, %c0_24, %c0_25] : memref<1x1x128xf32, #tpu.memory_space<vmem>>, vector<1x1x128xf32>
    %56 = vector.shape_cast %55 : vector<1x1x128xf32> to vector<1x128xf32>
    %57 = vector.broadcast %56 : vector<1x128xf32> to vector<24x128xf32>
    %58 = arith.addf %54, %57 : vector<24x128xf32>
    %cst_26 = arith.constant 0.000000e+00 : f32
    %59 = vector.broadcast %cst_26 : f32 to vector<24x128xf32>
    %60 = arith.maximumf %58, %59 : vector<24x128xf32>
    %c0_27 = arith.constant 0 : index
    %c0_28 = arith.constant 0 : index
    %c0_29 = arith.constant 0 : index
    %61 = vector.load %arg8[%c0_27, %c0_28, %c0_29] : memref<1x128x128xf32, #tpu.memory_space<vmem>>, vector<1x128x128xf32>
    %62 = vector.shape_cast %61 : vector<1x128x128xf32> to vector<128x128xf32>
    %cst_30 = arith.constant dense<0.000000e+00> : vector<24x128xf32>
    %63 = tpu.matmul %60, %62, %cst_30 {dimension_numbers = #tpu.dot_dimension_numbers<[1], [0], [0], [1], [0, 0, 1, 1], [], []>} : vector<24x128xf32>, vector<128x128xf32>, vector<24x128xf32> -> vector<24x128xf32>
    %c0_31 = arith.constant 0 : index
    %c0_32 = arith.constant 0 : index
    %c0_33 = arith.constant 0 : index
    %64 = vector.load %arg9[%c0_31, %c0_32, %c0_33] : memref<1x1x128xf32, #tpu.memory_space<vmem>>, vector<1x1x128xf32>
    %65 = vector.shape_cast %64 : vector<1x1x128xf32> to vector<1x128xf32>
    %66 = vector.broadcast %65 : vector<1x128xf32> to vector<24x128xf32>
    %67 = arith.addf %63, %66 : vector<24x128xf32>
    %cst_34 = arith.constant 0.000000e+00 : f32
    %68 = vector.broadcast %cst_34 : f32 to vector<24x128xf32>
    %69 = arith.maximumf %67, %68 : vector<24x128xf32>
    %c0_35 = arith.constant 0 : index
    %c0_36 = arith.constant 0 : index
    %c0_37 = arith.constant 0 : index
    %70 = vector.load %arg10[%c0_35, %c0_36, %c0_37] : memref<1x128x256xf32, #tpu.memory_space<vmem>>, vector<1x128x256xf32>
    %71 = vector.shape_cast %70 : vector<1x128x256xf32> to vector<128x256xf32>
    %cst_38 = arith.constant dense<0.000000e+00> : vector<24x256xf32>
    %72 = tpu.matmul %69, %71, %cst_38 {dimension_numbers = #tpu.dot_dimension_numbers<[1], [0], [0], [1], [0, 0, 1, 1], [], []>} : vector<24x128xf32>, vector<128x256xf32>, vector<24x256xf32> -> vector<24x256xf32>
    %c0_39 = arith.constant 0 : index
    %c0_40 = arith.constant 0 : index
    %c0_41 = arith.constant 0 : index
    %73 = vector.load %arg11[%c0_39, %c0_40, %c0_41] : memref<1x1x256xf32, #tpu.memory_space<vmem>>, vector<1x1x256xf32>
    %74 = vector.shape_cast %73 : vector<1x1x256xf32> to vector<1x256xf32>
    %75 = vector.broadcast %74 : vector<1x256xf32> to vector<24x256xf32>
    %76 = arith.addf %72, %75 : vector<24x256xf32>
    %c0_42 = arith.constant 0 : index
    %c0_43 = arith.constant 0 : index
    %c0_44 = arith.constant 0 : index
    %77 = vector.load %arg12[%c0_42, %c0_43, %c0_44] : memref<1x24x256xf32, #tpu.memory_space<vmem>>, vector<1x24x256xf32>
    %78 = vector.shape_cast %77 : vector<1x24x256xf32> to vector<24x256xf32>
    %79 = vector.shape_cast %76 : vector<24x256xf32> to vector<1x24x256xf32>
    tpu.vector_store %arg12[%c0_42, %c0_43, %c0_44], %79 {strides = array<i32>} : memref<1x24x256xf32, #tpu.memory_space<vmem>>, vector<1x24x256xf32>,
    return
  }
  func.func @transform_0(%arg0: i32, %arg1: memref<3xi32, #tpu.memory_space<smem>>) -> (i32, i32, i32) {
    %c0_i32 = arith.constant 0 : i32
    %c0_i32_0 = arith.constant 0 : i32
    %c0_i32_1 = arith.constant 0 : i32
    return %arg0, %c0_i32, %c0_i32_0 : i32, i32, i32
  }
  func.func @transform_1(%arg0: i32, %arg1: memref<3xi32, #tpu.memory_space<smem>>) -> (i32, i32) {
    %c0_i32 = arith.constant 0 : i32
    %c0_i32_0 = arith.constant 0 : i32
    %c0_i32_1 = arith.constant 0 : i32
    return %c0_i32, %c0_i32_0 : i32, i32
  }
  func.func @transform_2(%arg0: i32, %arg1: memref<3xi32, #tpu.memory_space<smem>>) -> (i32, i32, i32) {
    %c0_i32 = arith.constant 0 : i32
    %c0_i32_0 = arith.constant 0 : i32
    %c0_i32_1 = arith.constant 0 : i32
    return %arg0, %c0_i32, %c0_i32_0 : i32, i32, i32
  }
  func.func @transform_3(%arg0: i32, %arg1: memref<3xi32, #tpu.memory_space<smem>>) -> (i32, i32, i32) {
    %c0_i32 = arith.constant 0 : i32
    %c0_i32_0 = arith.constant 0 : i32
    %c0_i32_1 = arith.constant 0 : i32
    return %arg0, %c0_i32, %c0_i32_0 : i32, i32, i32
  }
  func.func @transform_4(%arg0: i32, %arg1: memref<3xi32, #tpu.memory_space<smem>>) -> (i32, i32, i32) {
    %c0_i32 = arith.constant 0 : i32
    %c0_i32_0 = arith.constant 0 : i32
    %c0_i32_1 = arith.constant 0 : i32
    return %arg0, %c0_i32, %c0_i32_0 : i32, i32, i32
  }
  func.func @transform_5(%arg0: i32, %arg1: memref<3xi32, #tpu.memory_space<smem>>) -> (i32, i32, i32) {
    %c0_i32 = arith.constant 0 : i32
    %c0_i32_0 = arith.constant 0 : i32
    %c0_i32_1 = arith.constant 0 : i32
    return %arg0, %c0_i32, %c0_i32_0 : i32, i32, i32
  }
  func.func @transform_6(%arg0: i32, %arg1: memref<3xi32, #tpu.memory_space<smem>>) -> (i32, i32, i32) {
    %c0_i32 = arith.constant 0 : i32
    %c0_i32_0 = arith.constant 0 : i32
    %c0_i32_1 = arith.constant 0 : i32
    return %arg0, %c0_i32, %c0_i32_0 : i32, i32, i32
  }
  func.func @transform_7(%arg0: i32, %arg1: memref<3xi32, #tpu.memory_space<smem>>) -> (i32, i32, i32) {
    %c0_i32 = arith.constant 0 : i32
    %c0_i32_0 = arith.constant 0 : i32
    %c0_i32_1 = arith.constant 0 : i32
    return %arg0, %c0_i32, %c0_i32_0 : i32, i32, i32
  }
  func.func @transform_8(%arg0: i32, %arg1: memref<3xi32, #tpu.memory_space<smem>>) -> (i32, i32, i32) {
    %c0_i32 = arith.constant 0 : i32
    %c0_i32_0 = arith.constant 0 : i32
    %c0_i32_1 = arith.constant 0 : i32
    return %arg0, %c0_i32, %c0_i32_0 : i32, i32, i32
  }
  func.func @transform_9(%arg0: i32, %arg1: memref<3xi32, #tpu.memory_space<smem>>) -> (i32, i32, i32) {
    %c0_i32 = arith.constant 0 : i32
    %c0_i32_0 = arith.constant 0 : i32
    %c0_i32_1 = arith.constant 0 : i32
    return %arg0, %c0_i32, %c0_i32_0 : i32, i32, i32
  }
  func.func @transform_10(%arg0: i32, %arg1: memref<3xi32, #tpu.memory_space<smem>>) -> (i32, i32, i32) {
    %c0_i32 = arith.constant 0 : i32
    %c0_i32_0 = arith.constant 0 : i32
    %c0_i32_1 = arith.constant 0 : i32
    return %arg0, %c0_i32, %c0_i32_0 : i32, i32, i32
  }
}

</mosaic_0001>

<bundles_post_ra>
// kernel: tpu_custom_call.1
= control target key start
LH: loop header
LB: loop body
LE: loop exit
PB: predicated region body
PF: predicated region fallthrough
CT: control target
= control target key end

     0   :  { %s3411_s0 = inlined_call_operand.vmem [shape: s32[3], index: 0, kind: input, shape index: {}]   ;;  %s3412_s1 = inlined_call_operand.vmem [shape: f32[3,24,1], index: 1, kind: input, shape index: {}]   ;;  %s3413_s2 = inlined_call_operand.vmem [shape: f32[1,64], index: 2, kind: input, shape index: {}]   ;;  %s3414_s3 = inlined_call_operand.hbm [shape: f32[3,128,128], index: 3, kind: input, shape index: {}]   ;;  %s3415_s4 = inlined_call_operand.vmem [shape: f32[3,1,128], index: 4, kind: input, shape index: {}]   ;;  %s3416_s5 = inlined_call_operand.hbm [shape: f32[3,128,128], index: 5, kind: input, shape index: {}]   ;;  %s3417_s6 = inlined_call_operand.vmem [shape: f32[3,1,128], index: 6, kind: input, shape index: {}]   ;;  %s3418_s7 = inlined_call_operand.hbm [shape: f32[3,128,128], index: 7, kind: input, shape index: {}]   ;;  %s3419_s8 = inlined_call_operand.vmem [shape: f32[3,1,128], index: 8, kind: input, shape index: {}]   ;;  %s3420_s9 = inlined_call_operand.hbm [shape: f32[3,128,256], index: 9, kind: input, shape index: {}]   ;;  %s3421_s10 = inlined_call_operand.vmem [shape: f32[3,1,256], index: 10, kind: input, shape index: {}]   ;;  %s3422_s11 = inlined_call_operand.hbm [shape: f32[3,24,256], index: 11, kind: output, shape index: {}]  }
   0x1   :  { %3437 = sst [smem:[#allocation24_spill]] %s3414_s3  ;;  %s16_s19 = sshll.u32 %s3411_s0, 4  ;;  %s17_s19 = int_to_ptr.vmem [resolvable:$true] %s16_s19 }
   0x2   :  { %3438 = sst [smem:[#allocation25_spill]] %s3416_s5  ;;  %s2420_s20 = scalar_lea.vmem %s17_s19, 16 }
   0x3   :  { %3439 = sst [smem:[#allocation26_spill]] %s3422_s11  ;;  %p2421_p0 = scmp.ne.s32.totalorder %s17_s19, %s2420_s20 }
   0x4   :  { %p2425_p1 = scmp.lt.s32.totalorder %s17_s19, %s17_s19  ;;  %p2426_p2 = scmp.lt.s32.totalorder %s2420_s20, %s2420_s20 }
   0x6   :  { %p2427_p3 = por %p2426_p2, %p2425_p1 }
   0x8   :  { %p2428_p4 = pnand %p2427_p3, %p2421_p0 }
   0xa   :  { %2431 = shalt.err (!%p2428_p4)  }
   0xb   :  { %s2630_s21 = smov [#allocation3]  }
   0xc   :  { %19 = dma.vmem_to_smem %s17_s19, 16, %s2630_s21, [#allocation2] }
   0xd   :  { %2596 = dma.done.wait [#allocation2], 16 }
   0xe   :  { %2597 = vsyncadd [#allocation2], 4294967280 }
   0xf   :  { %21 = sfence }
  0x10   :  { %22 = vsyncpa [#allocation5], 0 }
  0x11   :  { %24 = vsyncpa [#allocation5 + $0x1], 0 }
  0x12   :  { %25 = vsyncpa [#allocation8], 0 }
  0x13   :  { %27 = vsyncpa [#allocation8 + $0x1], 0 }
  0x14   :  { %28 = vsyncpa [#allocation11], 0 }
  0x15   :  { %30 = vsyncpa [#allocation11 + $0x1], 0 }
  0x16   :  { %31 = vsyncpa [#allocation6], 0 }
  0x17   :  { %33 = vsyncpa [#allocation6 + $0x1], 0  ;;  %s2716_s0 = smov 0   ;;  %s2718_s22 = smov 0  }
  0x18   :  { %s2720_s23 = smov 0   ;;  %s2722_s24 = smov 0  }
  0x19 LB: > { %3440 = sst [smem:[#allocation18_spill]] %s2616_s0  ;;  %s2737_s25 = sadd.s32 4294967295, %s2628_s24   ;;  %s2628_s24 = sphi %s2722_s24, %s3469_s24   ;;  %s2624_s23 = sphi %s2720_s23, %s3471_s23   ;;  %s2620_s22 = sphi %s2718_s22, %s3473_s22   ;;  %s2616_s0 = sphi %s2716_s0, %s3472_s0  }
  0x1a   : > { %3441 = sst [smem:[#allocation19_spill]] %s2624_s23  ;;  %s1965_s26 = sadd.s32 4294967294, %s2628_s24  }
  0x1b   : > { %s2741_s27 = sadd.s32 1, %s2628_s24   ;;  %s93_s28 = sadd.s32 1, %s2624_s23 }
  0x1c   : > { %3442 = sst [smem:[#allocation20_spill]] %s2741_s27  ;;  %s90_s29 = ssub.s32 %s2628_s24, %s2741_s27 }
  0x1d   : > { %p100_p5 = scmp.ne.s32.totalorder %s2624_s23, %s2620_s22  ;;  %p91_p6 = scmp.eq.s32.totalorder %s90_s29, 0 }
  0x1e   : > { %p101_p7 = scmp.eq.s32.totalorder %s2628_s24, 0  ;;  %p106_p8 = scmp.ne.s32.totalorder %s2620_s22, %s2616_s0 }
  0x1f   : > { %p107_p9 = scmp.eq.s32.totalorder %s2737_s25, 0  ;;  %p312_p12 = scmp.eq.s32.totalorder %s2737_s25, 2 }
  0x20   : > { %s2753_s30 = scalar_select %p91_p6, %s2624_s23, %s93_s28  }
  0x21   : > { %p102_p10 = por %p101_p7, %p100_p5  ;;  %p2755_p11 = por %p107_p9, %p106_p8 }
  0x22   : > { %3443 = sst [smem:[#allocation21_spill]] %s2753_s30  ;;  %p318_p13 = scmp.eq.s32.totalorder %s1965_s26, 2 }
  0x23   : > { %s3444_s12 = scalar_select %p2755_p11, 1, 0 }
  0x24   : > { %p2352_p0 = scmp.lt.s32.totalorder %s2628_s24, 3  ;;  %p2761_p1 = por %p312_p12, %p100_p5 }
  0x25   : > { %p2765_p2 = por %p318_p13, %p106_p8  ;;  %s2770_s15 = sand.u32 1, %s2624_s23  }
  0x26   : > { %s3445_s13 = scalar_select %p2761_p1, 1, 0 }
  0x27   : > { %s3447_s14 = scalar_select %p2765_p2, 1, 0 }
  0x28   : > { %3446 = sst [smem:[#allocation22_spill]] %s3445_s13  ;;  %s2773_s16 = sshll.u32 %s2628_s24, 11 }
  0x29   : > { %3448 = sst [smem:[#allocation23_spill]] %s3447_s14  ;;  %s2776_s17 = sshll.u32 %s2770_s15, 7 }
  0x2a   : > { %p2778_p3 = pnand %p2352_p0, %p102_p10  ;;  %s376_s19 = sand.u32 1, %s2628_s24  }
  0x2b   : > { %s3450_s5 = sld [smem:[#allocation25_spill]]  ;;  %s380_s28 = scalar_lea.vmem [#allocation7], %s2776_s17 }
  0x2c   : > { %s387_s29 = sshll.u32 %s380_s28, 4  ;;  %s2793_s30 = scalar_lea.sflag [#allocation8], %s376_s19  ;;  %s2790_s29 = int_to_ptr.vmem [resolvable:$true] %s387_s29 }
  0x2d   : > { %p2799_p6 = pneg %p2778_p3 }
  0x31   : > { %s2787_s26 = scalar_lea.hbm %s3450_s5, %s2773_s16  ;;  %s2437_s28 = scalar_lea.hbm %s3450_s5, 6144 }
  0x32   : > { %s2432_s23 = scalar_lea.hbm %s2787_s26, 2048  ;;  %p2438_p9 = scmp.lt.u32.totalorder %s2787_s26, %s3450_s5 }
  0x33   : > { %p2433_p5 = scmp.ne.s32.totalorder %s2787_s26, %s2432_s23  ;;  %p2439_p10 = scmp.lt.u32.totalorder %s2437_s28, %s2432_s23 }
  0x34   : > { %p2441_p13 = scmp.lt.u32.totalorder %s2432_s23, %s2787_s26 }
  0x35   : > { %p2435_p7 = pnand %p2799_p6, %p2433_p5  ;;  %p2440_p12 = por %p2439_p10, %p2438_p9 }
  0x37   : > { %p2436_p8 = pneg %p2435_p7  ;;  %p2442_p0 = por %p2441_p13, %p2440_p12 }
  0x39   : > { %p2443_p4 = pnand %p2442_p0, %p2436_p8 }
  0x3b   : > { %2446 = shalt.err (!%p2443_p4)
}
  0x3c   : > { %s2447_s19 = scalar_lea.vmem %s2790_s29, 2048  ;;  %s2631_s20 = smov [#allocation7]  }
  0x3d   : > { %p2448_p5 = scmp.ne.s32.totalorder %s2790_s29, %s2447_s19  ;;  %s2452_s21 = sshll.u32 %s2631_s20, 4  ;;  %s2453_s21 = int_to_ptr.vmem [resolvable:$false] %s2452_s21 }
  0x3e   : > { %s2454_s0 = scalar_lea.vmem %s2453_s21, 4096  ;;  %p2455_p1 = scmp.lt.s32.totalorder %s2790_s29, %s2453_s21 }
  0x3f   : > { %p2450_p7 = pnand %p2448_p5, %p2799_p6  ;;  %p2456_p11 = scmp.lt.s32.totalorder %s2454_s0, %s2447_s19 }
  0x41   : > { %p2451_p2 = pneg %p2450_p7  ;;  %p2457_p9 = por %p2456_p11, %p2455_p1 }
  0x43   : > { %p2458_p10 = pnand %p2457_p9, %p2451_p2 }
  0x45   : > { %2461 = shalt.err (!%p2458_p10)
}
  0x46   : > { %s3430_s23 = smov 128   ;;  %s3432_s14 = smov 8  }
  0x47   : > { %2341 = dma.hbm_to_vmem [thread:$0]  (!%p2778_p3), %s2787_s26, 2048, %s2790_s29, %s2793_s30, %s3430_s23, %s3430_s23, %s3432_s14  }
  0x48   : > { %p456_p11 = scmp.lt.s32.totalorder %s2628_s24, 4  ;;  %s3452_s3 = sld [smem:[#allocation24_spill]] }
  0x49   : > { %p3453_p1 = scmp.ge.s32.totalorder %s2628_s24, 1  ;;  %s353_s0 = scalar_lea.vmem [#allocation4], %s2776_s17 }
  0x4a   : > { %s360_s5 = sshll.u32 %s353_s0, 4  ;;  %s350_s26 = scalar_lea.sflag [#allocation5], %s2770_s15  ;;  %s2840_s5 = int_to_ptr.vmem [resolvable:$true] %s360_s5 }
  0x4b   : > { %p2835_p2 = pnand %p3453_p1, %p456_p11 }
  0x4d   : > { %s3454_s21 = scalar_select %p2835_p2, 1, 0 }
  0x4e   : > { %s2831_s20 = scalar_lea.hbm %s3452_s3, %s2773_s16  ;;  %s2467_s23 = scalar_lea.hbm %s3452_s3, 6144 }
  0x4f   : > { %s2462_s29 = scalar_lea.hbm %s2831_s20, 2048  ;;  %p2468_p13 = scmp.lt.u32.totalorder %s2831_s20, %s3452_s3 }
  0x50   : > { %p2463_p4 = scmp.ne.s32.totalorder %s2831_s20, %s2462_s29  ;;  %p2469_p0 = scmp.lt.u32.totalorder %s2467_s23, %s2462_s29 }
  0x51   : > { %p2471_p7 = scmp.lt.u32.totalorder %s2462_s29, %s2831_s20 }
  0x52   : > { %p2465_p8 = pnand %p2463_p4, %p2799_p6  ;;  %p2470_p5 = por %p2469_p0, %p2468_p13 }
  0x54   : > { %p2466_p12 = pneg %p2465_p8  ;;  %p2472_p9 = por %p2471_p7, %p2470_p5 }
  0x56   : > { %p2473_p10 = pnand %p2472_p9, %p2466_p12 }
  0x58   : > { %2476 = shalt.err (!%p2473_p10)
}
  0x59   : > { %s2477_s0 = scalar_lea.vmem %s2840_s5, 2048  ;;  %s2634_s28 = smov [#allocation4]  }
  0x5a   : > { %p2478_p11 = scmp.ne.s32.totalorder %s2840_s5, %s2477_s0  ;;  %s2482_s19 = sshll.u32 %s2634_s28, 4  ;;  %s2483_s19 = int_to_ptr.vmem [resolvable:$false] %s2482_s19 }
  0x5b   : > { %s2484_s11 = scalar_lea.vmem %s2483_s19, 4096  ;;  %p2485_p8 = scmp.lt.s32.totalorder %s2840_s5, %s2483_s19 }
  0x5c   : > { %p2480_p1 = pnand %p2478_p11, %p2799_p6  ;;  %p2486_p2 = scmp.lt.s32.totalorder %s2484_s11, %s2477_s0 }
  0x5e   : > { %p2481_p4 = pneg %p2480_p1  ;;  %p2487_p13 = por %p2486_p2, %p2485_p8 }
  0x60   : > { %p2488_p0 = pnand %p2487_p13, %p2481_p4 }
  0x62   : > { %2491 = shalt.err (!%p2488_p0)
}
  0x63   : > { %s3455_s23 = smov 8   ;;  %s3456_s14 = smov 128  }
  0x64   : > { %2338 = dma.hbm_to_vmem [thread:$0]  (!%p2778_p3), %s2831_s20, 2048, %s2840_s5, %s350_s26, %s3456_s14, %s3456_s14, %s3455_s23  }
  0x65   : > { %s2873_s0 = scalar_lea.hbm %s3418_s7, %s2773_s16  ;;  %s407_s19 = scalar_lea.vmem [#allocation9], %s2776_s17 }
  0x66   : > { %s414_s11 = sshll.u32 %s407_s19, 4  ;;  %s2492_s3 = scalar_lea.hbm %s2873_s0, 2048  ;;  %s2876_s11 = int_to_ptr.vmem [resolvable:$true] %s414_s11 }
  0x67   : > { %p2493_p2 = scmp.ne.s32.totalorder %s2873_s0, %s2492_s3  ;;  %s2497_s20 = scalar_lea.hbm %s3418_s7, 6144 }
  0x68   : > { %p2498_p7 = scmp.lt.u32.totalorder %s2873_s0, %s3418_s7  ;;  %p2499_p9 = scmp.lt.u32.totalorder %s2497_s20, %s2492_s3 }
  0x69   : > { %p2495_p12 = pnand %p2493_p2, %p2799_p6  ;;  %p2501_p11 = scmp.lt.u32.totalorder %s2492_s3, %s2873_s0 }
  0x6a   : > { %p2500_p10 = por %p2499_p9, %p2498_p7 }
  0x6b   : > { %p2496_p5 = pneg %p2495_p12 }
  0x6c   : > { %p2502_p1 = por %p2501_p11, %p2500_p10 }
  0x6e   : > { %p2503_p4 = pnand %p2502_p1, %p2496_p5 }
  0x70   : > { %2506 = shalt.err (!%p2503_p4)
}
  0x71   : > { %s2507_s17 = scalar_lea.vmem %s2876_s11, 2048  ;;  %s2635_s13 = smov [#allocation9]  }
  0x72   : > { %p2508_p8 = scmp.ne.s32.totalorder %s2876_s11, %s2507_s17  ;;  %s2512_s29 = sshll.u32 %s2635_s13, 4  ;;  %s2513_s29 = int_to_ptr.vmem [resolvable:$false] %s2512_s29 }
  0x73   : > { %s2514_s28 = scalar_lea.vmem %s2513_s29, 4096  ;;  %p2515_p2 = scmp.lt.s32.totalorder %s2876_s11, %s2513_s29 }
  0x74   : > { %p2510_p13 = pnand %p2508_p8, %p2799_p6  ;;  %p2516_p12 = scmp.lt.s32.totalorder %s2514_s28, %s2507_s17 }
  0x76   : > { %p2511_p0 = pneg %p2510_p13  ;;  %p2517_p7 = por %p2516_p12, %p2515_p2 }
  0x78   : > { %p2518_p9 = pnand %p2517_p7, %p2511_p0 }
  0x7a   : > { %2521 = shalt.err (!%p2518_p9)
}
  0x7b   : > { %2344 = dma.hbm_to_vmem [thread:$0]  (!%p2778_p3), %s2873_s0, 2048, %s2876_s11, %s2793_s30, %s3456_s14, %s3456_s14, %s3455_s23  }
  0x7c   : > { %s1977_s3 = sshll.u32 %s2770_s15, 8  ;;  %s2021_s19 = sshll.u32 %s2628_s24, 12 }
  0x7d   : > { %s2908_s26 = scalar_lea.hbm %s3420_s9, %s2021_s19  ;;  %s434_s16 = scalar_lea.vmem [#allocation10], %s1977_s3 }
  0x7e   : > { %s441_s17 = sshll.u32 %s434_s16, 4  ;;  %s431_s13 = scalar_lea.sflag [#allocation11], %s2770_s15  ;;  %s2910_s17 = int_to_ptr.vmem [resolvable:$true] %s441_s17 }
  0x7f   : > { %s2522_s29 = scalar_lea.hbm %s2908_s26, 4096  ;;  %s2527_s14 = scalar_lea.hbm %s3420_s9, 12288 }
  0x80   : > { %p2523_p5 = scmp.ne.s32.totalorder %s2908_s26, %s2522_s29  ;;  %p2528_p1 = scmp.lt.u32.totalorder %s2908_s26, %s3420_s9 }
  0x81   : > { %p2529_p4 = scmp.lt.u32.totalorder %s2527_s14, %s2522_s29  ;;  %p2531_p13 = scmp.lt.u32.totalorder %s2522_s29, %s2908_s26 }
  0x82   : > { %p2525_p10 = pnand %p2523_p5, %p2799_p6 }
  0x83   : > { %p2530_p8 = por %p2529_p4, %p2528_p1 }
  0x84   : > { %p2526_p11 = pneg %p2525_p10 }
  0x85   : > { %p2532_p0 = por %p2531_p13, %p2530_p8 }
  0x87   : > { %p2533_p2 = pnand %p2532_p0, %p2526_p11 }
  0x89   : > { %2536 = shalt.err (!%p2533_p2)
}
  0x8a   : > { %s2537_s28 = scalar_lea.vmem %s2910_s17, 4096  ;;  %s2636_s3 = smov [#allocation10]  }
  0x8b   : > { %p2538_p12 = scmp.ne.s32.totalorder %s2910_s17, %s2537_s28  ;;  %s2542_s19 = sshll.u32 %s2636_s3, 4  ;;  %s2543_s19 = int_to_ptr.vmem [resolvable:$false] %s2542_s19 }
  0x8c   : > { %s2544_s5 = scalar_lea.vmem %s2543_s19, 8192  ;;  %p2545_p5 = scmp.lt.s32.totalorder %s2910_s17, %s2543_s19 }
  0x8d   : > { %p2540_p7 = pnand %p2538_p12, %p2799_p6  ;;  %p2546_p10 = scmp.lt.s32.totalorder %s2544_s5, %s2537_s28 }
  0x8f   : > { %p2541_p9 = pneg %p2540_p7  ;;  %p2547_p1 = por %p2546_p10, %p2545_p5 }
  0x91   : > { %p2548_p4 = pnand %p2547_p1, %p2541_p9 }
  0x93   : > { %2551 = shalt.err (!%p2548_p4)
}
  0x94   : > { %s2637_s20 = smov 256   ;;  %s2638_s16 = smov 16  }
  0x95   : > { %2347 = dma.hbm_to_vmem [thread:$0]  (!%p2778_p3), %s2908_s26, 4096, %s2910_s17, %s431_s13, %s2637_s20, %s2637_s20, %s2638_s16  }
  0x96   : > { %p3457_p6 = scmp.ne.s32.totalorder %s3454_s21, 0 }
  0x97   : > { %s2939_s27 = sand.u32 (!%p3457_p6), 1, %s2620_s22   ;;  %p3458_p11 = scmp.ne.s32.totalorder (!%p3457_p6), %s3444_s12, 0 }
  0x98   : > { %460 = sbr.rel (%p3457_p6) target bundleno = 1642 (0x66a), region = 60  ;;  %s1981_s29 = sshll.u32 (!%p3457_p6), %s2939_s27, 7 }
  0x99   : > { %s463_s30 = scalar_lea.sflag (!%p3457_p6), [#allocation5], %s2939_s27  ;;  %s2943_s23 = scalar_lea.vmem (!%p3457_p6), [#allocation4], %s1981_s29 }
  0x9f   : > { %2599 = dma.done.wait (%p3458_p11), %s463_s30, 2048  }
  0xa0   : > { %2601 = vsyncadd (%p3458_p11), %s463_s30, 4294965248  ;;  %s471_s15 = sand.u32 1, %s2737_s25   ;;  %s2950_s21 = scalar_lea.vmem [#allocation7], %s1981_s29 }
  0xa1   : > { %s472_s18 = scalar_lea.sflag [#allocation8], %s471_s15 }
  0xa2   : > { %2603 = dma.done.wait (%p3458_p11), %s472_s18, 4096  }
  0xa3   : > { %2605 = vsyncadd (%p3458_p11), %s472_s18, 4294963200  ;;  %s1984_s26 = sshll.u32 %s2939_s27, 8  ;;  %s2957_s17 = scalar_lea.vmem [#allocation9], %s1981_s29 }
  0xa4   : > { %s490_s13 = scalar_lea.sflag [#allocation11], %s2939_s27  ;;  %s2960_s14 = scalar_lea.vmem [#allocation10], %s1984_s26 }
  0xa5   : > { %2607 = dma.done.wait (%p3458_p11), %s490_s13, 4096  }
  0xa6   : > { %2609 = vsyncadd (%p3458_p11), %s490_s13, 4294963200  ;;  %p563_p3 = scmp.lt.s32.totalorder %s2737_s25, 2  ;;  %v585_v0 = vlaneseq  ;;  %s581_s0 = sld [smem:[#allocation3 + %s2737_s25]]  ;;  %vm596_vm0 = vcmask 7168   ;;  %v2639_v24 = vmov 0   ;;  %v1310_v53 = vld [vmem:[%s2943_s23] sm:$0xff] }
  0xa7   : > { %2405 = vset.pattern.permute.xlu0 %v2639_v24  ;;  %2404 = vset.pattern.permute.xlu1 %v2639_v24  ;;  %v1311_v54 = vld [vmem:[%s2943_s23 + $0x8] sm:$0xff]  ;;  %v1312_v55 = vld [vmem:[%s2943_s23 + $0x10] sm:$0xff]  ;;  %v2640_v56 = vmov 0.0|0.0   ;;  %v1313_v58 = vld [vmem:[%s2943_s23 + $0x18] sm:$0xff]  ;;  %s2649_s30 = smov 64   ;;  %s3463_s16 = sld [smem:[#allocation22_spill]] }
  0xa8   : > { %s2969_s11 = scalar_select %p563_p3, %s2737_s25, 2  ;;  %v2971_v1 = vshrl.u32 %v585_v0, 7  ;;  %2202 = vmatprep.subr.bf16.mxu0 %v2640_v56  ;;  %v2203_v57 = vpack.c.bf16 %v1311_v54, %v1310_v53  ;;  %2226 = vmatprep.subr.bf16.mxu1 %v2640_v56  ;;  %v2206_v59 = vpack.c.bf16 %v1313_v58, %v1312_v55  ;;  %v1314_v60 = vld [vmem:[%s2943_s23 + $0x20] sm:$0xff]  ;;  %v1315_v61 = vld [vmem:[%s2943_s23 + $0x28] sm:$0xff]  ;;  %v1316_v63 = vld [vmem:[%s2943_s23 + $0x30] sm:$0xff] }
  0xa9   : > { %v2209_v62 = vpack.c.bf16 %v1315_v61, %v1314_v60  ;;  %v1317_v0 = vld [vmem:[%s2943_s23 + $0x38] sm:$0xff]  ;;  %v1322_v24 = vld [vmem:[%s2943_s23 + $0x60] sm:$0xff]  ;;  %v2642_v54 = vmov 2475754826   ;;  %v2643_v58 = vmov 2131351028  }
  0xaa   : > { %s2307_s28 = smul.u32 24, %s2969_s11  ;;  %v587_v2 = vadd.s32 8, %v2971_v1  ;;  %v588_v3 = vadd.s32 16, %v2971_v1  ;;  %2204 = vmatpush3.bf16.msra.mxu0 %v2203_v57  ;;  %v2644_v60 = vmov 2102212464   ;;  %s570_s18 = scalar_lea.vmem %s3415_s4, %s2969_s11 }
  0xab   : > { %2205 = vmatprep.subr.bf16.mxu0 %v2640_v56  ;;  %s2324_s29 = smul.u32 768, %s2737_s25  ;;  %s3464_s15 = sld [smem:[#allocation26_spill]] }
  0xac   : > { %s567_s12 = scalar_lea.vmem %s3412_s1, %s2307_s28  ;;  %v589_v7 = vstv %s581_s0  ;;  %s576_s28 = scalar_lea.vmem %s3419_s8, %s2969_s11 }
  0xad   : > { %v582_v4 = vld [vmem:[%s567_s12] sm:$0xff]  ;;  %v583_v5 = vld [vmem:[%s567_s12 + $0x8] sm:$0xff]  ;;  %v584_v6 = vld [vmem:[%s567_s12 + $0x10] sm:$0xff]  ;;  %vm590_vm1 = vcmp.lt.s32.totalorder %v2971_v1, %v589_v7  ;;  %vm591_vm2 = vcmp.lt.s32.totalorder %v587_v2, %v589_v7  ;;  %vm592_vm3 = vcmp.lt.s32.totalorder %v588_v3, %v589_v7  ;;  %v2212_v3 = vpack.c.bf16 %v1317_v0, %v1316_v63  ;;  %p3465_p13 = scmp.ne.s32.totalorder %s3463_s16, 0  ;;  %s2650_s26 = smov [#allocation12]  }
  0xae   : > { %v593_v8 = vsel %vm590_vm1, %v582_v4, inf  ;;  %v594_v9 = vsel %vm591_vm2, %v583_v5, inf  ;;  %v595_v10 = vsel %vm592_vm3, %v584_v6, inf  ;;  %v612_v11 = vsel %vm590_vm1, %v582_v4, -inf  ;;  %2207 = vmatpush3.bf16.msra.mxu0 %v2206_v59  ;;  %v1987_v2 = vld [vmem:[%s3413_s2] ss:$0 sm:$0xff] }
  0xaf   : > { %v597_v12 = vsel %vm596_vm0, %v593_v8, inf  ;;  %v598_v13 = vsel %vm596_vm0, %v594_v9, inf  ;;  %v599_v14 = vsel %vm596_vm0, %v595_v10, inf  ;;  %v613_v15 = vsel %vm591_vm2, %v583_v5, -inf  ;;  %2208 = vmatprep.subr.bf16.mxu0 %v2640_v56  ;;  %v1319_v7 = vld [vmem:[%s2943_s23 + $0x48] sm:$0xff] }
  0xb0   : > { %v600_v16 = vmin.f32 %v597_v12, %v598_v13  ;;  %v614_v17 = vsel %vm592_vm3, %v584_v6, -inf  ;;  %v615_v18 = vsel %vm596_vm0, %v612_v11, -inf  ;;  %v616_v19 = vsel %vm596_vm0, %v613_v15, -inf  ;;  %v1321_v15 = vld [vmem:[%s2943_s23 + $0x58] sm:$0xff] }
  0xb1   : > { %v617_v20 = vsel %vm596_vm0, %v614_v17, -inf  ;;  %v618_v21 = vmax.f32 %v615_v18, %v616_v19 }
  0xb2   : > { %v601_v22 = vmin.f32 %v600_v16, %v599_v14  ;;  %2210 = vmatpush3.bf16.msra.mxu0 %v2209_v62  ;;  %v1320_v14 = vld [vmem:[%s2943_s23 + $0x50] sm:$0xff]  ;;  %v2645_v62 = vmov 920167782  }
  0xb3   : > { %v619_v23 = vmax.f32 %v618_v21, %v617_v20  ;;  %2211 = vmatprep.subr.bf16.mxu0 %v2640_v56 }
  0xb4   : > { %602 = vmin.xlane.f32.xlu0 %v601_v22 }
  0xb6   : > { %2213 = vmatpush3.bf16.msra.mxu0 %v2212_v3 }
  0xb7   : > { %2214 = vmatprep.subr.bf16.mxu0 %v2640_v56 }
  0xb8   : > { %620 = vmax.xlane.f32.xlu0 %v619_v23  ;;  %v2218_v23 = vpack.c.bf16 %v1321_v15, %v1320_v14 }
 0x141   : > { %v603_v25 = vpop.xlane.xlu0 %602 }
 0x142   : > { %v604_v26 = vrot.slane %v603_v25, 4 }
 0x144   : > { %v605_v27 = vmin.f32 %v603_v25, %v604_v26 }
 0x145   : > { %v621_v28 = vpop.xlane.xlu0 %620 }
 0x146   : > { %v606_v29 = vrot.slane %v605_v27, 2  ;;  %v622_v30 = vrot.slane %v621_v28, 4 }
 0x148   : > { %v623_v31 = vmax.f32 %v621_v28, %v622_v30  ;;  %v607_v32 = vmin.f32 %v605_v27, %v606_v29  ;;  %v1323_v28 = vld [vmem:[%s2943_s23 + $0x68] sm:$0xff] }
 0x14a   : > { %v624_v33 = vrot.slane %v623_v31, 2  ;;  %v608_v34 = vrot.slane %v607_v32, 1 }
 0x14c   : > { %v609_v35 = vmin.f32 %v607_v32, %v608_v34  ;;  %v625_v36 = vmax.f32 %v623_v31, %v624_v33  ;;  %v2221_v33 = vpack.c.bf16 %v1323_v28, %v1322_v24  ;;  %v1324_v34 = vld [vmem:[%s2943_s23 + $0x70] sm:$0xff] }
 0x14e   : > { %2308 = vpush %v609_v35  ;;  %v626_v37 = vrot.slane %v625_v36, 1  ;;  %v1325_v35 = vld [vmem:[%s2943_s23 + $0x78] sm:$0xff] }
 0x150   : > { %v627_v38 = vmax.f32 %v625_v36, %v626_v37 }
 0x152   : > { %2310 = vpush %v627_v38 }
 0x17f   : > { %s2309_s5 = spop %2308 }
 0x180   : > { %v611_v39 = vstv %s2309_s5  ;;  %s2306_s5 = smul.u32 48, %s2939_s27 }
 0x181   : > { %v634_v43 = vsub.f32 %v584_v6, %v611_v39  ;;  %v632_v44 = vsub.f32 %v582_v4, %v611_v39  ;;  %v633_v46 = vsub.f32 %v583_v5, %v611_v39  ;;  %v1318_v6 = vld [vmem:[%s2943_s23 + $0x40] sm:$0xff] }
 0x182   : > { %v2215_v12 = vpack.c.bf16 %v1319_v7, %v1318_v6  ;;  %v2646_v6 = vmov 1326507024  }
 0x183   : > { %s2311_s20 = spop %2310 }
 0x184   : > { %v629_v40 = vstv %s2311_s20  ;;  %2216 = vmatpush3.bf16.msra.mxu0 %v2215_v12  ;;  %s562_s20 = scalar_lea.vmem [#allocation12], %s2306_s5 }
 0x185   : > { %v630_v41 = vsub.f32 %v629_v40, %v611_v39  ;;  %2217 = vmatprep.subr.bf16.mxu0 %v2640_v56 }
 0x187   : > { %vm631_vm4 = vcmp.eq.f32.partialorder %v630_v41, 0.0 }
 0x188   : > { %v635_v42 = vsel %vm631_vm4, 1.0, %v630_v41  ;;  %2219 = vmatpush3.bf16.msra.mxu0 %v2218_v23 }
 0x189   : > { %2406 = vrcp.f32 %v635_v42  ;;  %2220 = vmatprep.subr.bf16.mxu0 %v2640_v56  ;;  %v2224_v42 = vpack.c.bf16 %v1325_v35, %v1324_v34 }
 0x18c   : > { %2222 = vmatpush3.bf16.msra.mxu0 %v2221_v33 }
 0x18d   : > { %2223 = vmatprep.subr.bf16.mxu0 %v2640_v56 }
 0x190   : > { %2225 = vmatpush3.bf16.msra.mxu0 %v2224_v42 }
 0x191   : > { %2250 = vmatprep.subr.bf16.mxu0 %v2640_v56 }
 0x193   : > { %v2407_v45 = vpop.eup %2406 }
 0x194   : > { %v639_v47 = vmul.f32 %v2407_v45, %v634_v43  ;;  %v637_v48 = vmul.f32 %v2407_v45, %v632_v44  ;;  %v638_v51 = vmul.f32 %v2407_v45, %v633_v46 }
 0x196   : > { %v644_v49 = vsel %vm631_vm4, 0.0, %v639_v47  ;;  %v642_v50 = vsel %vm631_vm4, 0.0, %v637_v48  ;;  %v643_v52 = vsel %vm631_vm4, 0.0, %v638_v51 }
 0x197   : > { %658 = vperm.xlu0 %2405, %v644_v49   ;;  %648 = vperm.xlu1 %2404, %v642_v50  }
 0x19b   : > { %653 = vperm.xlu1 %2404, %v643_v52   ;;  %v2641_v52 = vmov 683565275  }
 0x216   : > { %v659_v4 = vpop.permute.xlu0 %658  ;;  %v649_v5 = vpop.permute.xlu1 %648 }
 0x217   : > { %v669_v8 = vmul.f32 %v1987_v2, %v659_v4  ;;  %v667_v9 = vmul.f32 %v1987_v2, %v649_v5 }
 0x219   : > { %v3004_v10 = vmul.f32 6.2831855, %v669_v8  ;;  %v3006_v11 = vmul.f32 6.2831855, %v667_v9 }
 0x21a   : > { %v654_v13 = vpop.permute.xlu1 %653 }
 0x21b   : > { %v879_v16 = vand.u32 2147483647, %v3004_v10  ;;  %v882_v17 = vand.u32 2139095040, %v3004_v10  ;;  %v673_v18 = vand.u32 2147483647, %v3006_v11  ;;  %v676_v19 = vand.u32 2139095040, %v3006_v11 }
 0x21c   : > { %v668_v20 = vmul.f32 %v1987_v2, %v654_v13 }
 0x21d   : > { %v883_v21 = vshrl.u32 %v882_v17, 23  ;;  %v886_v22 = vand.u32 8388607, %v879_v16  ;;  %v677_v25 = vshrl.u32 %v676_v19, 23  ;;  %v680_v26 = vand.u32 8388607, %v673_v18 }
 0x21e   : > { %v3020_v27 = vmul.f32 6.2831855, %v668_v20 }
 0x21f   : > { %v1996_v29 = vadd.s32 4294967169, %v883_v21  ;;  %v1988_v30 = vadd.s32 4294967169, %v677_v25  ;;  %v887_v36 = vor.u32 8388608, %v886_v22  ;;  %v681_v37 = vor.u32 8388608, %v680_v26 }
 0x220   : > { %v779_v31 = vand.u32 2139095040, %v3020_v27  ;;  %v776_v46 = vand.u32 2147483647, %v3020_v27 }
 0x221   : > { %v889_v32 = vadd.s32 1, %v1996_v29  ;;  %v683_v38 = vadd.s32 1, %v1988_v30  ;;  %v3029_v47 = vshll.u32 %v887_v36, 8  ;;  %v3035_v50 = vshll.u32 %v681_v37, 8 }
 0x222   : > { %v780_v39 = vshrl.u32 %v779_v31, 23 }
 0x223   : > { %vm890_vm5 = vcmp.gt.s32.totalorder %v889_v32, 0  ;;  %vm684_vm6 = vcmp.gt.s32.totalorder %v683_v38, 0 }
 0x224   : > { %v891_v40 = vsel %vm890_vm5, %v889_v32, 0  ;;  %v1992_v41 = vadd.s32 4294967169, %v780_v39  ;;  %v685_v45 = vsel %vm684_vm6, %v683_v38, 0 }
 0x225   : > { %v892_v43 = vshrl.u32 %v891_v40, 5  ;;  %v893_v44 = vand.u32 31, %v891_v40  ;;  %v3031_v48 = vshrl.u32 %v685_v45, 5  ;;  %v3033_v49 = vand.u32 31, %v685_v45 }
 0x226   : > { %v3040_v57 = vadd.s32 1, %v1992_v41 }
 0x227   : > { %v894_v51 = vsub.s32 32, %v893_v44  ;;  %v896_v53 = vshll.u32 %v2641_v52, %v893_v44  ;;  %v899_v55 = vshll.u32 %v2642_v54, %v893_v44  ;;  %v902_v59 = vshll.u32 %v2643_v58, %v893_v44 }
 0x228   : > { %v905_v61 = vshll.u32 %v2644_v60, %v893_v44  ;;  %v908_v63 = vshll.u32 %v2645_v62, %v893_v44  ;;  %vm911_vm7 = vcmp.lt.s32.totalorder %v892_v43, 1  ;;  %vm912_vm8 = vcmp.lt.s32.totalorder %v892_v43, 2 }
 0x229   : > { %v897_v0 = vshrl.u32 %v2642_v54, %v894_v51  ;;  %v900_v2 = vshrl.u32 %v2643_v58, %v894_v51  ;;  %v903_v3 = vshrl.u32 %v2644_v60, %v894_v51  ;;  %v895_v4 = vshrl.u32 %v2641_v52, %v894_v51 }
 0x22a   : > { %v906_v5 = vshrl.u32 %v2645_v62, %v894_v51  ;;  %v909_v7 = vshrl.u32 %v2646_v6, %v894_v51  ;;  %vm913_vm9 = vcmp.lt.s32.totalorder %v892_v43, 3  ;;  %v688_v13 = vsub.s32 32, %v3033_v49 }
 0x22b   : > { %v898_v8 = vor.u32 %v897_v0, %v896_v53  ;;  %v901_v9 = vor.u32 %v900_v2, %v899_v55  ;;  %v904_v12 = vor.u32 %v903_v3, %v902_v59  ;;  %vm914_vm10 = vcmp.lt.s32.totalorder %v892_v43, 4 }
 0x22c   : > { %v907_v14 = vor.u32 %v906_v5, %v905_v61  ;;  %v910_v15 = vor.u32 %v909_v7, %v908_v63  ;;  %v690_v17 = vshll.u32 %v2641_v52, %v3033_v49  ;;  %v693_v26 = vshll.u32 %v2642_v54, %v3033_v49 }
 0x22d   : > { %v915_v19 = vsel %vm911_vm7, %v895_v4, %v898_v8  ;;  %v916_v20 = vsel %vm914_vm10, %v904_v12, 2102212464  ;;  %v919_v21 = vsel %vm911_vm7, %v898_v8, %v901_v9  ;;  %v923_v22 = vsel %vm911_vm7, %v901_v9, %v904_v12 }
 0x22e   : > { %v917_v23 = vsel %vm913_vm9, %v901_v9, %v916_v20  ;;  %v920_v24 = vsel %vm914_vm10, %v907_v14, 920167782  ;;  %v924_v25 = vsel %vm914_vm10, %v910_v15, 1326507024  ;;  %v689_v30 = vshrl.u32 %v2641_v52, %v688_v13 }
 0x22f   : > { %v921_v28 = vsel %vm913_vm9, %v904_v12, %v920_v24  ;;  %v925_v29 = vsel %vm913_vm9, %v907_v14, %v924_v25  ;;  %v691_v31 = vshrl.u32 %v2642_v54, %v688_v13  ;;  %v918_v32 = vsel %vm912_vm8, %v915_v19, %v917_v23 }
 0x230   : > { %v922_v33 = vsel %vm912_vm8, %v919_v21, %v921_v28  ;;  %v926_v34 = vsel %vm912_vm8, %v923_v22, %v925_v29  ;;  %v694_v35 = vshrl.u32 %v2643_v58, %v688_v13  ;;  %v696_v42 = vshll.u32 %v2643_v58, %v3033_v49 }
 0x231   : > { %v3070_v36 = vmul.u32.u64.low %v3029_v47, %v926_v34  ;;  %v3071_v37 = vmul.u32.u64.high %v3029_v47, %v926_v34, %v3070_v36  ;;  %v3074_v38 = vmul.u32.u64.low %v3029_v47, %v922_v33  ;;  %v3075_v39 = vmul.u32.u64.high %v3029_v47, %v922_v33, %v3074_v38 }
 0x232   : > { %v692_v40 = vor.u32 %v691_v31, %v690_v17  ;;  %v695_v41 = vor.u32 %v694_v35, %v693_v26  ;;  %v697_v44 = vshrl.u32 %v2644_v60, %v688_v13  ;;  %v934_v43 = vmul.u32 %v3029_v47, %v918_v32 }
 0x233   : > { %v699_v45 = vshll.u32 %v2644_v60, %v3033_v49  ;;  %v700_v51 = vshrl.u32 %v2645_v62, %v688_v13  ;;  %v703_v53 = vshrl.u32 %v2646_v6, %v688_v13  ;;  %v702_v59 = vshll.u32 %v2645_v62, %v3033_v49 }
 0x234   : > { %v698_v55 = vor.u32 %v697_v44, %v696_v42  ;;  %vm705_vm11 = vcmp.lt.s32.totalorder %v3031_v48, 1  ;;  %vm706_vm12 = vcmp.lt.s32.totalorder %v3031_v48, 2  ;;  %vm936_vm13 = vc.u32 %v3071_v37, %v3074_v38 }
 0x235   : > { %v937_v47 = vadd.s32 1, %v3075_v39  ;;  %v701_v61 = vor.u32 %v700_v51, %v699_v45  ;;  %vm707_vm14 = vcmp.lt.s32.totalorder %v3031_v48, 3  ;;  %v704_v63 = vor.u32 %v703_v53, %v702_v59 }
 0x236   : > { %vm708_vm15 = vcmp.lt.s32.totalorder %v3031_v48, 4  ;;  %v709_v0 = vsel %vm705_vm11, %v689_v30, %v692_v40  ;;  %v713_v2 = vsel %vm705_vm11, %v692_v40, %v695_v41  ;;  %v717_v5 = vsel %vm705_vm11, %v695_v41, %v698_v55 }
 0x237   : > { %v938_v3 = vsel %vm936_vm13, %v937_v47, %v3075_v39  ;;  %v710_v49 = vsel %vm708_vm15, %v698_v55, 2102212464  ;;  %v714_v4 = vsel %vm708_vm15, %v701_v61, 920167782  ;;  %v718_v12 = vsel %vm708_vm15, %v704_v63, 1326507024 }
 0x238   : > { %v939_v7 = vadd.s32 %v938_v3, %v934_v43  ;;  %v711_v8 = vsel %vm707_vm14, %v695_v41, %v710_v49  ;;  %v715_v9 = vsel %vm707_vm14, %v698_v55, %v714_v4  ;;  %v719_v14 = vsel %vm707_vm14, %v701_v61, %v718_v12 }
 0x239   : > { %v716_v13 = vsel %vm706_vm12, %v713_v2, %v715_v9  ;;  %v783_v15 = vand.u32 8388607, %v776_v46  ;;  %vm787_vm0 = vcmp.gt.s32.totalorder %v3040_v57, 0  ;;  %v720_v19 = vsel %vm706_vm12, %v717_v5, %v719_v14 }
 0x23a   : > { %v940_v17 = vadd.s32 536870912, %v939_v7  ;;  %v3104_v20 = vmul.u32.u64.low %v3035_v50, %v716_v13  ;;  %v3105_v21 = vmul.u32.u64.high %v3035_v50, %v716_v13, %v3104_v20  ;;  %v712_v22 = vsel %vm706_vm12, %v709_v0, %v711_v8 }
 0x23b   : > { %v3111_v23 = vmul.u32.u64.low %v3035_v50, %v720_v19  ;;  %v3112_v24 = vmul.u32.u64.high %v3035_v50, %v720_v19, %v3111_v23  ;;  %v788_v25 = vsel %vm787_vm0, %v3040_v57, 0  ;;  %v784_v29 = vor.u32 8388608, %v783_v15 }
 0x23c   : > { %v3115_v26 = vshrl.u32 %v940_v17, 30  ;;  %v790_v28 = vand.u32 31, %v788_v25  ;;  %v728_v31 = vmul.u32 %v3035_v50, %v712_v22  ;;  %v731_v32 = vadd.s32 1, %v3105_v21 }
 0x23d   : > { %vm730_vm1 = vc.u32 %v3112_v24, %v3104_v20  ;;  %v789_v48 = vshrl.u32 %v788_v25, 5  ;;  %vm881_vm9 = vcmp.lt.s32.totalorder %v3004_v10, 0  ;;  %vm3163_vm10 = vcmp.le.f32.partialorder %v879_v16, 0.7853982 }
 0x23e   : > { %v942_v30 = vshll.u32 %v3115_v26, 30  ;;  %v791_v33 = vsub.s32 32, %v790_v28  ;;  %v793_v34 = vshll.u32 %v2641_v52, %v790_v28  ;;  %v796_v35 = vshll.u32 %v2642_v54, %v790_v28 }
 0x23f   : > { %v732_v36 = vsel %vm730_vm1, %v731_v32, %v3105_v21  ;;  %v799_v40 = vshll.u32 %v2643_v58, %v790_v28  ;;  %v802_v44 = vshll.u32 %v2644_v60, %v790_v28  ;;  %v805_v53 = vshll.u32 %v2645_v62, %v790_v28 }
 0x240   : > { %v943_v57 = vsub.s32 %v939_v7, %v942_v30  ;;  %v794_v39 = vshrl.u32 %v2642_v54, %v791_v33  ;;  %v733_v41 = vadd.s32 %v732_v36, %v728_v31  ;;  %v797_v50 = vshrl.u32 %v2643_v58, %v791_v33 }
 0x241   : > { %v800_v42 = vshrl.u32 %v2644_v60, %v791_v33  ;;  %v803_v51 = vshrl.u32 %v2645_v62, %v791_v33  ;;  %v806_v54 = vshrl.u32 %v2646_v6, %v791_v33  ;;  %v792_v63 = vshrl.u32 %v2641_v52, %v791_v33 }
 0x242   : > { %v945_v43 = vsub.s32 0, %v943_v57  ;;  %v795_v45 = vor.u32 %v794_v39, %v793_v34  ;;  %v734_v55 = vadd.s32 536870912, %v733_v41  ;;  %v798_v59 = vor.u32 %v797_v50, %v796_v35 }
 0x243   : > { %v801_v47 = vor.u32 %v800_v42, %v799_v40  ;;  %v804_v0 = vor.u32 %v803_v51, %v802_v44  ;;  %v824_v58 = vshll.u32 %v784_v29, 8  ;;  %v807_v3 = vor.u32 %v806_v54, %v805_v53 }
 0x244   : > { %v1997_v61 = vmin.u32 %v945_v43, %v943_v57  ;;  %v3134_v2 = vshrl.u32 %v734_v55, 30  ;;  %vm808_vm2 = vcmp.lt.s32.totalorder %v789_v48, 1  ;;  %vm811_vm3 = vcmp.lt.s32.totalorder %v789_v48, 4 }
 0x245   : > { %vm809_vm4 = vcmp.lt.s32.totalorder %v789_v48, 2  ;;  %v813_v49 = vsel %vm811_vm3, %v801_v47, 2102212464  ;;  %v816_v4 = vsel %vm808_vm2, %v795_v45, %v798_v59  ;;  %vm810_vm5 = vcmp.lt.s32.totalorder %v789_v48, 3 }
 0x246   : > { %v947_v60 = vclz %v1997_v61  ;;  %v736_v62 = vshll.u32 %v3134_v2, 30  ;;  %v817_v5 = vsel %vm811_vm3, %v804_v0, 920167782  ;;  %v820_v7 = vsel %vm808_vm2, %v798_v59, %v801_v47 }
 0x247   : > { %v812_v8 = vsel %vm808_vm2, %v792_v63, %v795_v45  ;;  %v818_v9 = vsel %vm810_vm5, %v801_v47, %v817_v5  ;;  %v821_v52 = vsel %vm811_vm3, %v807_v3, 1326507024  ;;  %v814_v13 = vsel %vm810_vm5, %v798_v59, %v813_v49 }
 0x248   : > { %v1998_v6 = vadd.s32 4294967294, %v947_v60  ;;  %v737_v12 = vsub.s32 %v733_v41, %v736_v62  ;;  %v819_v14 = vsel %vm809_vm4, %v816_v4, %v818_v9  ;;  %v822_v15 = vsel %vm810_vm5, %v804_v0, %v821_v52 }
 0x249   : > { %v823_v17 = vsel %vm809_vm4, %v820_v7, %v822_v15  ;;  %v3139_v19 = vmul.u32.u64.low %v824_v58, %v819_v14  ;;  %v3140_v21 = vmul.u32.u64.high %v824_v58, %v819_v14, %v3139_v19  ;;  %v935_v29 = vadd.s32 %v3074_v38, %v3071_v37 }
 0x24a   : > { %vm1999_vm6 = vcmp.lt.s32.totalorder %v1998_v6, 0  ;;  %v739_v23 = vsub.s32 0, %v737_v12  ;;  %v3143_v25 = vmul.u32.u64.low %v824_v58, %v823_v17  ;;  %v3144_v28 = vmul.u32.u64.high %v824_v58, %v823_v17, %v3143_v25 }
 0x24b   : > { %v950_v22 = vsel %vm1999_vm6, 0, %v1998_v6  ;;  %v815_v32 = vsel %vm809_vm4, %v812_v8, %v814_v13  ;;  %v834_v39 = vadd.s32 1, %v3140_v21  ;;  %v729_v53 = vadd.s32 %v3104_v20, %v3112_v24 }
 0x24c   : > { %v951_v30 = vsub.s32 32, %v950_v22  ;;  %v955_v31 = vsub.s32 4294967266, %v950_v22  ;;  %v1989_v33 = vmin.u32 %v739_v23, %v737_v12  ;;  %v952_v34 = vshll.u32 %v943_v57, %v950_v22 }
 0x24d   : > { %v831_v41 = vmul.u32 %v824_v58, %v815_v32  ;;  %vm833_vm7 = vc.u32 %v3144_v28, %v3139_v19  ;;  %v965_v7 = vsub.s32 4, %v3115_v26  ;;  %v759_v14 = vsub.s32 4, %v3134_v2 }
 0x24e   : > { %v953_v35 = vshrl.u32 %v935_v29, %v951_v30  ;;  %v956_v36 = vadd.s32 127, %v955_v31  ;;  %v741_v40 = vclz %v1989_v33  ;;  %v835_v44 = vsel %vm833_vm7, %v834_v39, %v3140_v21 }
 0x24f   : > { %v836_v38 = vadd.s32 %v835_v44, %v831_v41  ;;  %v966_v16 = vsel %vm881_vm9, %v965_v7, %v3115_v26  ;;  %vm675_vm11 = vcmp.lt.s32.totalorder %v3006_v11, 0  ;;  %vm674_vm12 = vcmp.le.f32.partialorder %v673_v18, 0.7853982 }
 0x250   : > { %v954_v50 = vor.u32 %v953_v35, %v952_v34  ;;  %v957_v42 = vshll.u32 %v956_v36, 23  ;;  %v1990_v37 = vadd.s32 4294967294, %v741_v40  ;;  %v760_v22 = vsel %vm675_vm11, %v759_v14, %v3134_v2  ;;  %v1417_v14 = vld [vmem:[%s2950_s21 + $0x8] sm:$0xff] }
 0x251   : > { %v837_v48 = vadd.s32 536870912, %v836_v38  ;;  %v3181_v23 = vsel %vm3163_vm10, 0, %v966_v16  ;;  %v832_v26 = vadd.s32 %v3139_v19, %v3144_v28  ;;  %v762_v32 = vsel %vm674_vm12, 0, %v760_v22  ;;  %v1418_v16 = vld [vmem:[%s2950_s21 + $0x10] sm:$0xff] }
 0x252   : > { %v958_v43 = vor.u32 4788187, %v957_v42  ;;  %vm1991_vm8 = vcmp.lt.s32.totalorder %v1990_v37, 0  ;;  %v961_v57 = vcvt.s32.f32 %v954_v50  ;;  %v972_v18 = vand.u32 3, %v3181_v23 }
 0x253   : > { %v744_v51 = vsel %vm1991_vm8, 0, %v1990_v37  ;;  %v3155_v47 = vshrl.u32 %v837_v48, 30  ;;  %v1075_v41 = vadd.s32 3, %v762_v32  ;;  %vm2647_vm14 = vmmov 0  }
 0x254   : > { %v959_v45 = vand.u32 2147483647, %v958_v43  ;;  %v745_v55 = vsub.s32 32, %v744_v51  ;;  %v749_v59 = vsub.s32 4294967266, %v744_v51  ;;  %v746_v61 = vshll.u32 %v737_v12, %v744_v51 }
 0x255   : > { %v839_v58 = vshll.u32 %v3155_v47, 30  ;;  %v2648_v19 = vmov 0.0   ;;  %vm977_vm15 = vcmp.eq.s32.totalorder %v972_v18, 2  ;;  %vm974_vm0 = vcmp.eq.s32.totalorder %v972_v18, 0 }
 0x256   : > { %v962_v54 = vmul.f32 %v961_v57, %v959_v45  ;;  %v747_v63 = vshrl.u32 %v729_v53, %v745_v55  ;;  %v750_v0 = vadd.s32 127, %v749_v59  ;;  %2111 = vmatprep.mubr.msk.f32.mxu0 %vm2647_vm14, %v2648_v19  ;;  %2152 = vmatprep.mubr.msk.f32.mxu1 %vm2647_vm14, %v2648_v19  ;;  %v766_v37 = vand.u32 3, %v762_v32  ;;  %v1421_v32 = vld [vmem:[%s2950_s21 + $0x28] sm:$0xff] }
 0x257   : > { %v840_v4 = vsub.s32 %v836_v38, %v839_v58  ;;  %vm971_vm1 = vweird.f32 %v3004_v10  ;;  %vm973_vm2 = vcmp.lt.s32.totalorder %v972_v18, 2  ;;  %v1076_v45 = vand.u32 3, %v1075_v41 }
 0x258   : > { %v963_v3 = vxor.u32 2147483648, %v962_v54  ;;  %v748_v60 = vor.u32 %v747_v63, %v746_v61  ;;  %v751_v49 = vshll.u32 %v750_v0, 23  ;;  %vm778_vm3 = vcmp.lt.s32.totalorder %v3020_v27, 0 }
 0x259   : > { %v842_v24 = vsub.s32 0, %v840_v4  ;;  %v862_v59 = vsub.s32 4, %v3155_v47  ;;  %vm767_vm4 = vcmp.lt.s32.totalorder %v766_v37, 2  ;;  %vm768_vm5 = vcmp.eq.s32.totalorder %v766_v37, 0 }
 0x25a   : > { %v964_v62 = vsel %vm881_vm9, %v963_v3, %v962_v54  ;;  %v752_v20 = vor.u32 4788187, %v751_v49  ;;  %v755_v9 = vcvt.s32.f32 %v748_v60  ;;  %vm3212_vm6 = vcmp.le.f32.partialorder %v776_v46, 0.7853982 }
 0x25b   : > { %v967_v6 = vsel %vm3163_vm10, %v3004_v10, %v964_v62  ;;  %v1993_v52 = vmin.u32 %v842_v24, %v840_v4  ;;  %vm771_vm7 = vcmp.eq.s32.totalorder %v766_v37, 2  ;;  %vm1081_vm8 = vcmp.eq.s32.totalorder %v1076_v45, 2  ;;  %v1424_v37 = vld [vmem:[%s2950_s21 + $0x40] sm:$0xff] }
 0x25c   : > { %v753_v8 = vand.u32 2147483647, %v752_v20  ;;  %2408 = vcosq.f32 %v967_v6  ;;  %vm1077_vm9 = vcmp.lt.s32.totalorder %v1076_v45, 2  ;;  %vm1078_vm10 = vcmp.eq.s32.totalorder %v1076_v45, 0  ;;  %v1427_v45 = vld [vmem:[%s2950_s21 + $0x58] sm:$0xff]  ;;  %v1428_v10 = vld [vmem:[%s2950_s21 + $0x60] sm:$0xff] }
 0x25d   : > { %v844_v13 = vclz %v1993_v52  ;;  %2410 = vsinq.f32 %v967_v6  ;;  %v863_v46 = vsel %vm778_vm3, %v862_v59, %v3155_v47  ;;  %v1283_v47 = vadd.s32 3, %v3181_v23 }
 0x25e   : > { %v756_v12 = vmul.f32 %v755_v9, %v753_v8 }
 0x25f   : > { %v1994_v17 = vadd.s32 4294967294, %v844_v13  ;;  %v1284_v52 = vand.u32 3, %v1283_v47  ;;  %v1416_v13 = vld [vmem:[%s2950_s21] sm:$0xff]  ;;  %v1529_v47 = vld [vmem:[%s2957_s17 + $0x38] sm:$0xff] }
 0x260   : > { %v757_v15 = vxor.u32 2147483648, %v756_v12 }
 0x261   : > { %vm1995_vm13 = vcmp.lt.s32.totalorder %v1994_v17, 0 }
 0x262   : > { %v758_v21 = vsel %vm675_vm11, %v757_v15, %v756_v12  ;;  %v847_v25 = vsel %vm1995_vm13, 0, %v1994_v17  ;;  %vm765_vm11 = vweird.f32 %v3006_v11  ;;  %v2227_v17 = vpack.c.bf16 %v1417_v14, %v1416_v13  ;;  %v1532_v13 = vld [vmem:[%s2957_s17 + $0x50] sm:$0xff]  ;;  %v1533_v14 = vld [vmem:[%s2957_s17 + $0x58] sm:$0xff] }
 0x263   : > { %v761_v29 = vsel %vm674_vm12, %v3006_v11, %v758_v21  ;;  %v848_v30 = vsub.s32 32, %v847_v25  ;;  %v852_v31 = vsub.s32 4294967266, %v847_v25  ;;  %v849_v33 = vshll.u32 %v840_v4, %v847_v25  ;;  %v1419_v21 = vld [vmem:[%s2950_s21 + $0x18] sm:$0xff] }
 0x264   : > { %2412 = vcosq.f32 %v761_v29  ;;  %v865_v11 = vsel %vm3212_vm6, 0, %v863_v46  ;;  %2228 = vmatpush3.bf16.msra.mxu1 %v2227_v17  ;;  %v2230_v23 = vpack.c.bf16 %v1419_v21, %v1418_v16  ;;  %v1524_v46 = vld [vmem:[%s2957_s17 + $0x10] sm:$0xff]  ;;  %v2266_v16 = vpack.c.bf16 %v1533_v14, %v1532_v13  ;;  %v1535_v17 = vld [vmem:[%s2957_s17 + $0x68] sm:$0xff] }
 0x265   : > { %2414 = vsinq.f32 %v761_v29  ;;  %v850_v34 = vshrl.u32 %v832_v26, %v848_v30  ;;  %v853_v2 = vadd.s32 127, %v852_v31  ;;  %v1179_v8 = vadd.s32 3, %v865_v11  ;;  %2229 = vmatprep.subr.bf16.mxu1 %v2640_v56  ;;  %v1420_v31 = vld [vmem:[%s2950_s21 + $0x20] sm:$0xff]  ;;  %v1654_v13 = vld [vmem:[%s2960_s14 + $0xd0] sm:$0xff] }
 0x266   : > { %v3187_v35 = vpop.eup %2408  ;;  %v869_v9 = vand.u32 3, %v865_v11  ;;  %v1528_v11 = vld [vmem:[%s2957_s17 + $0x30] sm:$0xff] }
 0x267   : > { %v3189_v36 = vpop.eup %2410  ;;  %v851_v39 = vor.u32 %v850_v34, %v849_v33  ;;  %v854_v40 = vshll.u32 %v853_v2, 23  ;;  %v978_v50 = vxor.u32 2147483648, %v3187_v35  ;;  %v1180_v12 = vand.u32 3, %v1179_v8 }
 0x268   : > { %v975_v28 = vxor.u32 2147483648, %v3189_v36  ;;  %vm870_vm12 = vcmp.lt.s32.totalorder %v869_v9, 2  ;;  %vm871_vm13 = vcmp.eq.s32.totalorder %v869_v9, 0  ;;  %2231 = vmatpush3.bf16.msra.mxu1 %v2230_v23  ;;  %v2260_v8 = vpack.c.bf16 %v1529_v47, %v1528_v11  ;;  %v1650_v11 = vld [vmem:[%s2960_s14 + $0xb0] sm:$0xff]  ;;  %v1653_v47 = vld [vmem:[%s2960_s14 + $0xc8] sm:$0xff] }
 0x269   : > { %v855_v42 = vor.u32 4788187, %v854_v40  ;;  %v979_v44 = vsel %vm977_vm15, %v978_v50, %v3189_v36  ;;  %v858_v48 = vcvt.s32.f32 %v851_v39  ;;  %vm874_vm15 = vcmp.eq.s32.totalorder %v869_v9, 2  ;;  %2232 = vmatprep.subr.bf16.mxu1 %v2640_v56  ;;  %v1530_v9 = vld [vmem:[%s2957_s17 + $0x40] sm:$0xff] }
 0x26a   : > { %v976_v38 = vsel %vm974_vm0, %v3187_v35, %v975_v28  ;;  %vm1286_vm0 = vcmp.eq.s32.totalorder %v1284_v52, 0 }
 0x26b   : > { %v856_v43 = vand.u32 2147483647, %v855_v42  ;;  %v980_v57 = vsel %vm973_vm2, %v976_v38, %v979_v44  ;;  %vm1181_vm2 = vcmp.lt.s32.totalorder %v1180_v12, 2  ;;  %v1288_v34 = vsel %vm1286_vm0, %v3187_v35, %v975_v28  ;;  %v1422_v35 = vld [vmem:[%s2950_s21 + $0x30] sm:$0xff]  ;;  %v1425_v38 = vld [vmem:[%s2950_s21 + $0x48] sm:$0xff] }
 0x26c   : > { %v3206_v51 = vsel %vm971_vm1, nan, %v980_v57  ;;  %v2233_v44 = vpack.c.bf16 %v1421_v32, %v1420_v31 }
 0x26d   : > { %v859_v55 = vmul.f32 %v858_v48, %v856_v43  ;;  %v2239_v43 = vpack.c.bf16 %v1425_v38, %v1424_v37  ;;  %v1426_v48 = vld [vmem:[%s2950_s21 + $0x50] sm:$0xff] }
 0x26e   : > { %v2413_v53 = vpop.eup %2412  ;;  %2234 = vmatpush3.bf16.msra.mxu1 %v2233_v44  ;;  %v2242_v57 = vpack.c.bf16 %v1427_v45, %v1426_v48  ;;  %v1631_v44 = vld [vmem:[%s2960_s14 + $0x18] sm:$0xff]  ;;  %v1634_v48 = vld [vmem:[%s2960_s14 + $0x30] sm:$0xff]  ;;  %v1637_v45 = vld [vmem:[%s2960_s14 + $0x48] sm:$0xff] }
 0x26f   : > { %v2415_v54 = vpop.eup %2414  ;;  %v772_v61 = vxor.u32 2147483648, %v2413_v53  ;;  %v860_v0 = vxor.u32 2147483648, %v859_v55  ;;  %2235 = vmatprep.subr.bf16.mxu1 %v2640_v56 }
 0x270   : > { %v769_v58 = vxor.u32 2147483648, %v2415_v54 }
 0x271   : > { %v1083_v3 = vsel %vm1081_vm8, %v772_v61, %v2415_v54  ;;  %v773_v60 = vsel %vm771_vm7, %v772_v61, %v2415_v54  ;;  %v861_v49 = vsel %vm778_vm3, %v860_v0, %v859_v55  ;;  %vm1185_vm3 = vcmp.eq.s32.totalorder %v1180_v12, 2 }
 0x272   : > { %v1080_v4 = vsel %vm1078_vm10, %v2413_v53, %v769_v58  ;;  %v770_v62 = vsel %vm768_vm5, %v2413_v53, %v769_v58  ;;  %v864_v5 = vsel %vm3212_vm6, %v3020_v27, %v861_v49  ;;  %vm1289_vm5 = vcmp.eq.s32.totalorder %v1284_v52, 2  ;;  %v1429_v53 = vld [vmem:[%s2950_s21 + $0x68] sm:$0xff] }
 0x273   : > { %v1084_v20 = vsel %vm1077_vm9, %v1080_v4, %v1083_v3  ;;  %v774_v24 = vsel %vm767_vm4, %v770_v62, %v773_v60  ;;  %2416 = vcosq.f32 %v864_v5  ;;  %vm1182_vm4 = vcmp.eq.s32.totalorder %v1180_v12, 0  ;;  %v1430_v3 = vld [vmem:[%s2950_s21 + $0x70] sm:$0xff]  ;;  %v1431_v60 = vld [vmem:[%s2950_s21 + $0x78] sm:$0xff]  ;;  %v1522_v4 = vld [vmem:[%s2957_s17] sm:$0xff] }
 0x274   : > { %v1085_v7 = vsel %vm765_vm11, nan, %v1084_v20  ;;  %v3226_v6 = vsel %vm765_vm11, nan, %v774_v24  ;;  %2418 = vsinq.f32 %v864_v5  ;;  %v1291_v2 = vsel %vm1289_vm5, %v978_v50, %v3189_v36  ;;  %v1523_v62 = vld [vmem:[%s2957_s17 + $0x8] sm:$0xff]  ;;  %v1525_v24 = vld [vmem:[%s2957_s17 + $0x18] sm:$0xff]  ;;  %v1526_v5 = vld [vmem:[%s2957_s17 + $0x20] sm:$0xff] }
 0x275   : > { %1297 = vrot.lane.b32.xlu1 %v1085_v7, %s2649_s30  ;;  %vm868_vm6 = vweird.f32 %v3020_v27  ;;  %vm1285_vm7 = vcmp.lt.s32.totalorder %v1284_v52, 2  ;;  %v1423_v27 = vld [vmem:[%s2950_s21 + $0x38] sm:$0xff]  ;;  %v2245_v55 = vpack.c.bf16 %v1429_v53, %v1428_v10  ;;  %v2248_v49 = vpack.c.bf16 %v1431_v60, %v1430_v3  ;;  %v1527_v7 = vld [vmem:[%s2957_s17 + $0x28] sm:$0xff]  ;;  %v1642_v3 = vld [vmem:[%s2960_s14 + $0x70] sm:$0xff]  ;;  %s1762_s21 = scalar_lea.sflag [#allocation6], %s2939_s27 }
 0x276   : > { %v1292_v28 = vsel %vm1285_vm7, %v1288_v34, %v1291_v2  ;;  %v2236_v50 = vpack.c.bf16 %v1423_v27, %v1422_v35  ;;  %v2251_v20 = vpack.c.bf16 %v1523_v62, %v1522_v4  ;;  %v1531_v52 = vld [vmem:[%s2957_s17 + $0x48] sm:$0xff]  ;;  %v1630_v27 = vld [vmem:[%s2960_s14 + $0x10] sm:$0xff] }
 0x277   : > { %v1293_v36 = vsel %vm971_vm1, nan, %v1292_v28  ;;  %vm1306_vm1 = vcmask 523264   ;;  %v2263_v12 = vpack.c.bf16 %v1531_v52, %v1530_v9  ;;  %v1628_v28 = vld [vmem:[%s2960_s14] sm:$0xff]  ;;  %v1645_v60 = vld [vmem:[%s2960_s14 + $0x88] sm:$0xff] }
 0x278   : > { %2237 = vmatpush3.bf16.msra.mxu1 %v2236_v50  ;;  %v1635_v50 = vld [vmem:[%s2960_s14 + $0x38] sm:$0xff]  ;;  %v2276_v37 = vpack.c.bf16 %v1630_v27, %v1628_v28 }
 0x279   : > { %2238 = vmatprep.subr.bf16.mxu1 %v2640_v56 }
 0x27c   : > { %2240 = vmatpush3.bf16.msra.mxu1 %v2239_v43  ;;  %v1632_v43 = vld [vmem:[%s2960_s14 + $0x20] sm:$0xff] }
 0x27d   : > { %v2417_v15 = vpop.eup %2416  ;;  %2241 = vmatprep.subr.bf16.mxu1 %v2640_v56  ;;  %v2280_v10 = vpack.c.bf16 %v1634_v48, %v1632_v43 }
 0x27e   : > { %v2419_v22 = vpop.eup %2418  ;;  %v875_v25 = vxor.u32 2147483648, %v2417_v15 }
 0x27f   : > { %v872_v29 = vxor.u32 2147483648, %v2419_v22 }
 0x280   : > { %v1187_v26 = vsel %vm1185_vm3, %v875_v25, %v2419_v22  ;;  %v876_v30 = vsel %vm874_vm15, %v875_v25, %v2419_v22  ;;  %2243 = vmatpush3.bf16.msra.mxu1 %v2242_v57  ;;  %v2012_v22 = vld [vmem:[%s570_s18] ss:$0 sm:$0xff]  ;;  %v1639_v57 = vld [vmem:[%s2960_s14 + $0x58] sm:$0xff]  ;;  %s3368_s18 = scalar_lea.hbm %s3464_s15, %s2324_s29 }
 0x281   : > { %v1184_v18 = vsel %vm1182_vm4, %v2417_v15, %v872_v29  ;;  %v873_v33 = vsel %vm871_vm13, %v2417_v15, %v872_v29  ;;  %2244 = vmatprep.subr.bf16.mxu1 %v2640_v56  ;;  %v1534_v15 = vld [vmem:[%s2957_s17 + $0x60] sm:$0xff]  ;;  %v2282_v53 = vpack.c.bf16 %v1639_v57, %v1637_v45  ;;  %v1664_v57 = vsub.s32 0, %v2971_v1 }
 0x282   : > { %v1188_v39 = vsel %vm1181_vm2, %v1184_v18, %v1187_v26  ;;  %v877_v40 = vsel %vm870_vm12, %v873_v33, %v876_v30  ;;  %v2269_v21 = vpack.c.bf16 %v1535_v17, %v1534_v15 }
 0x283   : > { %v1189_v41 = vsel %vm868_vm6, nan, %v1188_v39  ;;  %v878_v42 = vsel %vm868_vm6, nan, %v877_v40  ;;  %v1536_v39 = vld [vmem:[%s2957_s17 + $0x70] sm:$0xff]  ;;  %v1537_v40 = vld [vmem:[%s2957_s17 + $0x78] sm:$0xff]  ;;  %s573_s17 = scalar_lea.vmem %s3417_s6, %s2969_s11 }
 0x284   : > { %1299 = vrot.lane.b32.xlu1 %v1189_v41, %s2649_s30  ;;  %2246 = vmatpush3.bf16.msra.mxu1 %v2245_v55  ;;  %v2272_v41 = vpack.c.bf16 %v1537_v40, %v1536_v39  ;;  %v1636_v55 = vld [vmem:[%s2960_s14 + $0x40] sm:$0xff]  ;;  %v1658_v39 = vld [vmem:[%s2960_s14 + $0xf0] sm:$0xff] }
 0x285   : > { %2247 = vmatprep.subr.bf16.mxu1 %v2640_v56 }
 0x288   : > { %1301 = vrot.lane.b32.xlu1 %v1293_v36, %s2649_s30  ;;  %2249 = vmatpush3.bf16.msra.mxu1 %v2248_v49  ;;  %v1633_v36 = vld [vmem:[%s2960_s14 + $0x28] sm:$0xff]  ;;  %v1647_v49 = vld [vmem:[%s2960_s14 + $0x98] sm:$0xff] }
 0x289   : > { %v2278_v38 = vpack.c.bf16 %v1635_v50, %v1633_v36  ;;  %v2290_v62 = vpack.c.bf16 %v1647_v49, %v1645_v60 }
 0x2e7   : > { %v1298_v59 = vpop.permute.xlu1 %1297 }
 0x2e8   : > { %v1307_v54 = vsel %vm1306_vm1, %v3226_v6, %v1298_v59  ;;  %v2257_v6 = vpack.c.bf16 %v1527_v7, %v1526_v5  ;;  %v1638_v59 = vld [vmem:[%s2960_s14 + $0x50] sm:$0xff] }
 0x2e9   : > { %2112 = vmatmul.mubr.f32.vlgmr.msra.gmra.mrb[0].mxu0 %v1307_v54  ;;  %v1641_v54 = vld [vmem:[%s2960_s14 + $0x68] sm:$0xff] }
 0x2ea   : > { %2114 = vmatprep.mubr.msk.f32.mxu0 %vm2647_vm14, %v2648_v19  ;;  %2252 = vmatpush3.bf16.msra.mxu0 %v2251_v20  ;;  %v1646_v20 = vld [vmem:[%s2960_s14 + $0x90] sm:$0xff] }
 0x2eb   : > { %2253 = vmatprep.subr.bf16.mxu0 %v2640_v56 }
 0x2f6   : > { %v1300_v61 = vpop.permute.xlu1 %1299 }
 0x2f7   : > { %v1308_v63 = vsel %vm1306_vm1, %v878_v42, %v1300_v61  ;;  %v1629_v42 = vld [vmem:[%s2960_s14 + $0x8] sm:$0xff]  ;;  %v1643_v61 = vld [vmem:[%s2960_s14 + $0x78] sm:$0xff] }
 0x2f8   : > { %2115 = vmatmul.mubr.f32.gmra.mrb[2].mxu0 %v1308_v63  ;;  %v2274_v35 = vpack.c.bf16 %v1631_v44, %v1629_v42  ;;  %v2284_v63 = vpack.c.bf16 %v1638_v59, %v1636_v55 }
 0x2f9   : > { %2117 = vmatprep.mubr.msk.f32.mxu0 %vm2647_vm14, %v2648_v19 }
 0x2fa   : > { %v1302_v0 = vpop.permute.xlu1 %1301  ;;  %2275 = vmatprep.subr.bf16.mxu1 %v2274_v35 }
 0x2fb   : > { %v1309_v58 = vsel %vm1306_vm1, %v3206_v51, %v1302_v0  ;;  %v2254_v51 = vpack.c.bf16 %v1525_v24, %v1524_v46  ;;  %v2286_v0 = vpack.c.bf16 %v1643_v61, %v1641_v54  ;;  %v1644_v46 = vld [vmem:[%s2960_s14 + $0x80] sm:$0xff]  ;;  %v1649_v24 = vld [vmem:[%s2960_s14 + $0xa8] sm:$0xff] }
 0x2fc   : > { %2118 = vmatmul.mubr.f32.gmra.mrb[4].mxu0 %v1309_v58  ;;  %v1640_v58 = vld [vmem:[%s2960_s14 + $0x60] sm:$0xff]  ;;  %v2292_v5 = vpack.c.bf16 %v1646_v20, %v1644_v46 }
 0x2fd   : > { %2193 = vmatprep.mubr.msk.f32.mxu0 %vm2647_vm14, %v2648_v19  ;;  %2255 = vmatpush3.bf16.msra.mxu0 %v2254_v51  ;;  %v2288_v4 = vpack.c.bf16 %v1642_v3, %v1640_v58  ;;  %v1651_v51 = vld [vmem:[%s2960_s14 + $0xb8] sm:$0xff] }
 0x2fe   : > { %2256 = vmatprep.subr.bf16.mxu0 %v2640_v56  ;;  %v2294_v7 = vpack.c.bf16 %v1651_v51, %v1649_v24 }
 0x301   : > { %2258 = vmatpush3.bf16.msra.mxu0 %v2257_v6  ;;  %v1648_v6 = vld [vmem:[%s2960_s14 + $0xa0] sm:$0xff] }
 0x302   : > { %2259 = vmatprep.subr.bf16.mxu0 %v2640_v56  ;;  %v2296_v9 = vpack.c.bf16 %v1650_v11, %v1648_v6 }
 0x305   : > { %2261 = vmatpush3.bf16.msra.mxu0 %v2260_v8  ;;  %v1655_v8 = vld [vmem:[%s2960_s14 + $0xd8] sm:$0xff] }
 0x306   : > { %2262 = vmatprep.subr.bf16.mxu0 %v2640_v56  ;;  %v2298_v52 = vpack.c.bf16 %v1655_v8, %v1653_v47 }
 0x309   : > { %2264 = vmatpush3.bf16.msra.mxu0 %v2263_v12  ;;  %v1652_v12 = vld [vmem:[%s2960_s14 + $0xc0] sm:$0xff] }
 0x30a   : > { %2265 = vmatprep.subr.bf16.mxu0 %v2640_v56  ;;  %v2300_v14 = vpack.c.bf16 %v1654_v13, %v1652_v12 }
 0x30d   : > { %2267 = vmatpush3.bf16.msra.mxu0 %v2266_v16  ;;  %v2013_v16 = vld [vmem:[%s573_s17] ss:$0 sm:$0xff]  ;;  %s2556_s17 = sshll.u32 %s2650_s26, 4  ;;  %s2557_s17 = int_to_ptr.vmem [resolvable:$false] %s2556_s17 }
 0x30e   : > { %2268 = vmatprep.subr.bf16.mxu0 %v2640_v56  ;;  %s2558_s13 = scalar_lea.vmem %s2557_s17, 1536 }
 0x311   : > { %2270 = vmatpush3.bf16.msra.mxu0 %v2269_v21 }
 0x312   : > { %2271 = vmatprep.subr.bf16.mxu0 %v2640_v56 }
 0x315   : > { %2273 = vmatpush3.bf16.msra.mxu0 %v2272_v41  ;;  %v2014_v41 = vld [vmem:[%s576_s28] ss:$0 sm:$0xff] }
 0x3bc   : > { %v1399_v25 = vpop.f32.mrb[0].mxu0 }
 0x3bd   : > { %v1400_v29 = vadd.f32 %v2012_v22, %v1399_v25  ;;  %v2113_v23 = vpop.f32.mrb[1].mxu0 }
 0x3bf   : > { %v1413_v26 = vmax.f32 %v1400_v29, 0.0 }
 0x3c1   : > { %2153 = vmatmul.mubr.f32.vlgmr.msra.gmra.mrb[0].mxu1 %v1413_v26 }
 0x3c2   : > { %2155 = vmatprep.mubr.msk.f32.mxu1 %vm2647_vm14, %v2648_v19  ;;  %2277 = vmatpush1.bf16.msra.mxu1 %v2276_v37 }
 0x3c3   : > { %2279 = vmatprep.subr.bf16.mxu1 %v2278_v38 }
 0x3c6   : > { %2281 = vmatpush1.bf16.msra.mxu1 %v2280_v10 }
 0x3c7   : > { %2283 = vmatprep.subr.bf16.mxu1 %v2282_v53  ;;  %v1668_v53 = vsub.s32 1, %v2971_v1 }
 0x3ca   : > { %2285 = vmatpush1.bf16.msra.mxu1 %v2284_v63 }
 0x3cb   : > { %v1404_v30 = vpop.f32.mrb[2].mxu0  ;;  %2287 = vmatprep.subr.bf16.mxu1 %v2286_v0 }
 0x3cc   : > { %v1405_v31 = vadd.f32 %v2012_v22, %v1404_v30  ;;  %v2116_v56 = vpop.f32.mrb[3].mxu0 }
 0x3ce   : > { %v1414_v32 = vmax.f32 %v1405_v31, 0.0  ;;  %2289 = vmatpush1.bf16.msra.mxu1 %v2288_v4 }
 0x3cf   : > { %v1409_v18 = vpop.f32.mrb[4].mxu0  ;;  %2291 = vmatprep.subr.bf16.mxu1 %v2290_v62 }
 0x3d0   : > { %v1410_v33 = vadd.f32 %v2012_v22, %v1409_v18  ;;  %v2119_v34 = vpop.f32.mrb[5].mxu0  ;;  %2156 = vmatmul.mubr.f32.gmra.mrb[2].mxu1 %v1414_v32  ;;  %v1657_v18 = vld [vmem:[%s2960_s14 + $0xe8] sm:$0xff] }
 0x3d1   : > { %2158 = vmatprep.mubr.msk.f32.mxu1 %vm2647_vm14, %v2648_v19  ;;  %v1656_v34 = vld [vmem:[%s2960_s14 + $0xe0] sm:$0xff] }
 0x3d2   : > { %v1415_v2 = vmax.f32 %v1410_v33, 0.0  ;;  %2293 = vmatpush1.bf16.msra.mxu1 %v2292_v5  ;;  %v1659_v33 = vld [vmem:[%s2960_s14 + $0xf8] sm:$0xff]  ;;  %v2304_v40 = vpack.c.bf16 %v1658_v39, %v1656_v34  ;;  %s1986_s14 = sshll.u32 %s2969_s11, 1  ;;  %s1775_s11 = sshll.u32 %s562_s20, 4  ;;  %s3363_s11 = int_to_ptr.vmem [resolvable:$true] %s1775_s11 }
 0x3d3   : > { %2295 = vmatprep.subr.bf16.mxu1 %v2294_v7  ;;  %s580_s12 = scalar_lea.vmem %s3421_s10, %s1986_s14  ;;  %s2552_s25 = scalar_lea.vmem %s3363_s11, 768 }
 0x3d4   : > { %2159 = vmatmul.mubr.f32.gmra.mrb[4].mxu1 %v1415_v2  ;;  %v2302_v2 = vpack.c.bf16 %v1659_v33, %v1657_v18  ;;  %v1660_v10 = vld [vmem:[%s580_s12] sm:$0x3]  ;;  %p2553_p8 = scmp.ne.s32.totalorder %s3363_s11, %s2552_s25  ;;  %p2559_p12 = scmp.lt.s32.totalorder %s3363_s11, %s2557_s17 }
 0x3d5   : > { %1736 = vmatprep.mubr.f32.mxu1 %v2648_v19  ;;  %v1665_v55 = vrot.slane %v1660_v10, %v1664_v57  ;;  %v1669_v59 = vrot.slane %v1660_v10, %v1668_v53  ;;  %p2560_p7 = scmp.lt.s32.totalorder %s2558_s13, %s2552_s25 }
 0x3d6   : > { %2297 = vmatpush1.bf16.msra.mxu1 %v2296_v9  ;;  %p2554_p0 = pnand %p2553_p8, %p3465_p13 }
 0x3d7   : > { %2299 = vmatprep.subr.bf16.mxu1 %v2298_v52  ;;  %p2561_p9 = por %p2560_p7, %p2559_p12 }
 0x3d8   : > { %p2555_p2 = pneg %p2554_p0 }
 0x3da   : > { %2301 = vmatpush1.bf16.msra.mxu1 %v2300_v14  ;;  %p2562_p5 = pnand %p2561_p9, %p2555_p2 }
 0x3db   : > { %2303 = vmatprep.subr.bf16.mxu1 %v2302_v2 }
 0x3de   : > { %2305 = vmatpush1.bf16.msra.mxu1 %v2304_v40 }
 0x494   : > { %v1505_v15 = vpop.f32.mrb[0].mxu1 }
 0x495   : > { %v1506_v17 = vadd.f32 %v2013_v16, %v1505_v15  ;;  %v2154_v21 = vpop.f32.mrb[1].mxu1 }
 0x497   : > { %v1519_v22 = vmax.f32 %v1506_v17, 0.0 }
 0x499   : > { %2194 = vmatmul.mubr.f32.vlgmr.msra.gmra.mrb[6].mxu0 %v1519_v22 }
 0x49a   : > { %2196 = vmatprep.mubr.msk.f32.mxu0 %vm2647_vm14, %v2648_v19 }
 0x4a3   : > { %v1510_v25 = vpop.f32.mrb[2].mxu1 }
 0x4a4   : > { %v1511_v29 = vadd.f32 %v2013_v16, %v1510_v25  ;;  %v2157_v23 = vpop.f32.mrb[3].mxu1 }
 0x4a6   : > { %v1520_v26 = vmax.f32 %v1511_v29, 0.0 }
 0x4a7   : > { %v1515_v30 = vpop.f32.mrb[4].mxu1 }
 0x4a8   : > { %v1516_v31 = vadd.f32 %v2013_v16, %v1515_v30  ;;  %v2160_v56 = vpop.f32.mrb[5].mxu1  ;;  %2197 = vmatmul.mubr.f32.gmra.mrb[8].mxu0 %v1520_v26 }
 0x4a9   : > { %2199 = vmatprep.mubr.msk.f32.mxu0 %vm2647_vm14, %v2648_v19 }
 0x4aa   : > { %v1521_v32 = vmax.f32 %v1516_v31, 0.0 }
 0x4ac   : > { %2200 = vmatmul.mubr.f32.gmra.mrb[10].mxu0 %v1521_v32 }
 0x56c   : > { %v1611_v42 = vpop.f32.mrb[6].mxu0 }
 0x56d   : > { %v1612_v44 = vadd.f32 %v2014_v41, %v1611_v42  ;;  %v2195_v28 = vpop.f32.mrb[7].mxu0 }
 0x56f   : > { %v1625_v35 = vmax.f32 %v1612_v44, 0.0 }
 0x571   : > { %1737 = vmatmul.mubr.f32.vlgmr.msra.gmra.mrb[6].mxu1 %v1625_v35 }
 0x572   : > { %1742 = vmatprep.mubr.f32.mxu1 %v2648_v19 }
 0x57b   : > { %v1616_v27 = vpop.f32.mrb[8].mxu0 }
 0x57c   : > { %v1617_v36 = vadd.f32 %v2014_v41, %v1616_v27  ;;  %v2198_v50 = vpop.f32.mrb[9].mxu0 }
 0x57e   : > { %v1626_v37 = vmax.f32 %v1617_v36, 0.0 }
 0x57f   : > { %v1621_v38 = vpop.f32.mrb[10].mxu0 }
 0x580   : > { %v1622_v43 = vadd.f32 %v2014_v41, %v1621_v38  ;;  %v2201_v48 = vpop.f32.mrb[11].mxu0  ;;  %1743 = vmatmul.mubr.f32.gmra.mrb[8].mxu1 %v1626_v37 }
 0x581   : > { %1748 = vmatprep.mubr.f32.mxu1 %v2648_v19 }
 0x582   : > { %v1627_v45 = vmax.f32 %v1622_v43, 0.0 }
 0x584   : > { %1749 = vmatmul.mubr.f32.gmra.mrb[10].mxu1 %v1627_v45 }
 0x644   : > { %v1738_v54 = vpop.f32.mrb[6].mxu1 }
 0x645   : > { %v1739_v61 = vadd.f32 %v1738_v54, %v1665_v55  ;;  %v1740_v63 = vpop.f32.mrb[7].mxu1 }
 0x646   : > { %v1741_v19 = vadd.f32 %v1740_v63, %v1669_v59 }
 0x647   : > { %1755 = vst [vmem:[%s562_s20] sm:$0xff] %v1739_v61 }
 0x648   : > { %1756 = vst [vmem:[%s562_s20 + $0x8] sm:$0xff] %v1741_v19 }
 0x653   : > { %v1744_v0 = vpop.f32.mrb[8].mxu1 }
 0x654   : > { %v1745_v58 = vadd.f32 %v1744_v0, %v1665_v55  ;;  %v1746_v3 = vpop.f32.mrb[9].mxu1 }
 0x655   : > { %v1747_v60 = vadd.f32 %v1746_v3, %v1669_v59 }
 0x656   : > { %1757 = vst [vmem:[%s562_s20 + $0x10] sm:$0xff] %v1745_v58 }
 0x657   : > { %1758 = vst [vmem:[%s562_s20 + $0x18] sm:$0xff] %v1747_v60  ;;  %v1750_v1 = vpop.f32.mrb[10].mxu1 }
 0x658   : > { %v1751_v49 = vadd.f32 %v1750_v1, %v1665_v55  ;;  %v1752_v4 = vpop.f32.mrb[11].mxu1 }
 0x659   : > { %v1753_v62 = vadd.f32 %v1752_v4, %v1669_v59 }
 0x65a   : > { %1759 = vst [vmem:[%s562_s20 + $0x20] sm:$0xff] %v1751_v49 }
 0x65b   : > { %1760 = vst [vmem:[%s562_s20 + $0x28] sm:$0xff] %v1753_v62 }
 0x65c   : > { %2565 = shalt.err (!%p2562_p5)
}
 0x65d   : > { %s2566_s0 = scalar_lea.hbm %s3368_s18, 768  ;;  %s2570_s3 = scalar_lea.hbm %s3464_s15, 2304 }
 0x65e   : > { %p2567_p10 = scmp.ne.s32.totalorder %s3368_s18, %s2566_s0  ;;  %p2571_p6 = scmp.lt.u32.totalorder %s3368_s18, %s3464_s15 }
 0x65f   : > { %p2572_p11 = scmp.lt.u32.totalorder %s2570_s3, %s2566_s0  ;;  %p2574_p8 = scmp.lt.u32.totalorder %s2566_s0, %s3368_s18 }
 0x660   : > { %p2568_p1 = pnand %p2567_p10, %p3465_p13 }
 0x661   : > { %p2573_p3 = por %p2572_p11, %p2571_p6 }
 0x662   : > { %p2569_p4 = pneg %p2568_p1 }
 0x663   : > { %p2575_p0 = por %p2574_p8, %p2573_p3 }
 0x665   : > { %p2576_p2 = pnand %p2575_p0, %p2569_p4 }
 0x667   : > { %2579 = shalt.err (!%p2576_p2)
}
 0x668   : > { %s2651_s5 = smov 256   ;;  %s2652_s20 = smov 16  }
 0x669   : > { %2333 = dma.vmem_to_hbm [thread:$0]  (%p3465_p13), %s3363_s11, 768, %s3368_s18, %s1762_s21, %s2651_s5, %s2651_s5, %s2652_s20  }
 0x66a PF: > { %s3466_s29 = sld [smem:[#allocation18_spill]]  ;;  %s3467_s30 = sld [smem:[#allocation23_spill]] }
 0x66b   : > { %p2353_p12 = scmp.ge.s32.totalorder %s2628_s24, 2 }
 0x670   : > { %s1790_s23 = sand.u32 1, %s3466_s29   ;;  %p3468_p7 = scmp.ne.s32.totalorder %s3467_s30, 0 }
 0x671   : > { %s1791_s25 = scalar_lea.sflag [#allocation6], %s1790_s23 }
 0x672   : > { %p2349_p9 = pnand %p2353_p12, %p3468_p7 }
 0x674   : > { %2611 = dma.done.wait (!%p2349_p9), %s1791_s25, 768  }
 0x675   : > { %2613 = vsyncadd (!%p2349_p9), %s1791_s25, 4294966528  ;;  %s3469_s24 = sld [smem:[#allocation20_spill]]  ;;  %s3470_s26 = sld [smem:[#allocation19_spill]] }
 0x676   : > { %s3471_s23 = sld [smem:[#allocation21_spill]]  ;;  %s3472_s0 = smov %s2620_s22 }
 0x67b   : > { %p36_p5 = scmp.ge.s32.totalorder %s3469_s24, 5   ;;  %s3473_s22 = smov %s3470_s26 }
 0x67d   :  { %38 = sbr.rel (!%p36_p5) target bundleno = 25 (0x19), region = 157 }
 0x684   :  { %1796 = vsyncpa [#allocation5], 1 }
 0x685   :  { %1798 = vsyncpa [#allocation5 + $0x1], 1 }
 0x686   :  { %1799 = vsyncpa [#allocation8], 1 }
 0x687   :  { %1801 = vsyncpa [#allocation8 + $0x1], 1 }
 0x688   :  { %1802 = vsyncpa [#allocation11], 1 }
 0x689   :  { %1804 = vsyncpa [#allocation11 + $0x1], 1 }
 0x68a   :  { %1805 = vsyncpa [#allocation6], 1 }
 0x68b   :  { %1807 = vsyncpa [#allocation6 + $0x1], 1 }

</bundles_post_ra>
